<compile_context>
chip_gen: v5e
topology: v5e:2x2
jax: 0.10.0
libtpu: 0.0.40
codegen_flags: <defaults>
</compile_context>

<pallas_src>
import functools
import math

import jax
import jax.numpy as jnp
from jax.experimental import pallas as pl
from jax.experimental.pallas import tpu as pltpu


CFG = dict(vocab=128, hidden=32, heads=4, head_dim=8, layers=2,
           intermediate=64, max_pos=64)
LN_EPS = 1e-12


# ----------------------------- in-kernel helpers ------------------------------

def _layernorm(x, g, b, eps):
    mu = jnp.mean(x, axis=-1, keepdims=True)
    var = jnp.mean(jnp.square(x - mu), axis=-1, keepdims=True)
    return (x - mu) * jax.lax.rsqrt(var + eps) * g + b


def _gelu(x):
    # TODO(synk): HF BERT uses exact erf-GELU; tanh approximation used here.
    c = math.sqrt(2.0 / math.pi)
    return 0.5 * x * (1.0 + jnp.tanh(c * (x + 0.044715 * x * x * x)))


# ----------------------------- fused encoder kernel ---------------------------

def _encoder_kernel(x_ref, maskb_ref, wqkv_ref, bqkv_ref, wo_ref,
                    w1_ref, b1_ref, w2_ref, vecs_ref, o_ref,
                    *, n_layers, n_heads, head_dim, bt, seq):
    """Full BERT encoder stack for a batch tile of `bt` rows per grid step."""
    H = n_heads * head_dim
    n = bt * seq

    x = x_ref[...].astype(jnp.float32).reshape(n, H)      # (N, H) activation slab
    mask_bias = maskb_ref[...]                             # (Bt, 1, S) additive bias
    vecs = vecs_ref[...]                                    # (2+6L, H) packed LN/bias vectors

    # Embedding LayerNorm (no residual).
    x = _layernorm(x, vecs[0:1, :], vecs[1:2, :], LN_EPS)

    for l in range(n_layers):
        base = 2 + 6 * l
        bo = vecs[base + 0:base + 1, :]
        ln1_g = vecs[base + 1:base + 2, :]
        ln1_b = vecs[base + 2:base + 3, :]
        b2 = vecs[base + 3:base + 4, :]
        ln2_g = vecs[base + 4:base + 5, :]
        ln2_b = vecs[base + 5:base + 6, :]

        # ---- fused QKV projection (one bf16 matmul, f32 accumulate) ----
        qkv = jnp.dot(x.astype(jnp.bfloat16), wqkv_ref[l],
                      preferred_element_type=jnp.float32) + bqkv_ref[l]   # (N, 3H)
        qkv3 = qkv.reshape(bt, seq, 3 * H)

        # ---- per-head attention (softmax scale already folded into Wq) ----
        ctx_heads = []
        for h in range(n_heads):
            o0 = h * head_dim
            qh = qkv3[:, :, o0:o0 + head_dim]
            kh = qkv3[:, :, H + o0:H + o0 + head_dim]
            vh = qkv3[:, :, 2 * H + o0:2 * H + o0 + head_dim]
            s = jnp.einsum('bqd,bkd->bqk', qh, kh,
                           preferred_element_type=jnp.float32) + mask_bias
            m = jnp.max(s, axis=-1, keepdims=True)
            p = jnp.exp(s - m)
            p = p * pl.reciprocal(jnp.sum(p, axis=-1, keepdims=True), approx=True)
            ctx_heads.append(jnp.einsum('bqk,bkd->bqd', p, vh,
                                        preferred_element_type=jnp.float32))
        ctx = jnp.concatenate(ctx_heads, axis=-1).reshape(n, H)           # (N, H)

        # ---- single output projection over the full H contraction ----
        attn = jnp.dot(ctx.astype(jnp.bfloat16), wo_ref[l],
                       preferred_element_type=jnp.float32) + bo
        x = _layernorm(x + attn, ln1_g, ln1_b, LN_EPS)

        # ---- feed-forward block ----
        h1 = jnp.dot(x.astype(jnp.bfloat16), w1_ref[l],
                     preferred_element_type=jnp.float32) + b1_ref[l]
        h1 = _gelu(h1)
        ffn = jnp.dot(h1.astype(jnp.bfloat16), w2_ref[l],
                      preferred_element_type=jnp.float32) + b2
        x = _layernorm(x + ffn, ln2_g, ln2_b, LN_EPS)

    # TODO(synk): at production H (multiple of 128) this store is lane-dense;
    #             at H=32 it is a masked vst, negligible at this size.
    o_ref[...] = x.reshape(bt, seq, H).astype(o_ref.dtype)


# ----------------------------- kernel wrapper ----------------------------------

_WEIGHT_KEYS = ("wqkv", "bqkv", "wo", "w1", "b1", "w2", "vecs")


def _resident_spec(arr):
    """Whole-array block, same block index every grid step -> stays in VMEM.

    TODO(synk): mark single-buffered (pipeline_mode=pl.Buffered(1)) when moving to
    per-layer streamed slabs at real sizes; constant-index inputs need no double buffer.
    """
    zeros = (0,) * arr.ndim
    return pl.BlockSpec(arr.shape, lambda b: zeros)


def encoder_stack(packed, x_emb, mask_bias):
    """x_emb: (B, S, H) summed embeddings; mask_bias: (B, 1, S) additive bias."""
    B, S, H = x_emb.shape
    # One grid step per TensorCore on v7x; a single extra (tiny) step on v5e/v6e.
    grid_n = 2 if (B % 2 == 0 and B >= 2) else 1
    bt = B // grid_n

    kern = functools.partial(_encoder_kernel,
                             n_layers=CFG["layers"],
                             n_heads=CFG["heads"],
                             head_dim=CFG["head_dim"],
                             bt=bt, seq=S)
    weights = [packed[k] for k in _WEIGHT_KEYS]
    in_specs = ([pl.BlockSpec((bt, S, H), lambda b: (b, 0, 0)),
                 pl.BlockSpec((bt, 1, S), lambda b: (b, 0, 0))]
                + [_resident_spec(w) for w in weights])
    return pl.pallas_call(
        kern,
        out_shape=jax.ShapeDtypeStruct((B, S, H), jnp.float32),
        grid=(grid_n,),
        in_specs=in_specs,
        out_specs=pl.BlockSpec((bt, S, H), lambda b: (b, 0, 0)),
        compiler_params=pltpu.CompilerParams(
            dimension_semantics=("parallel",)),
    )(x_emb, mask_bias, *weights)


# ----------------------------- BERT encode (glue + kernel) ---------------------

def bert_encode(packed, input_ids, attention_mask):
    """Returns (sequence_output [B,S,H], pooled_output = sequence_output[:,0,:])."""
    B, S = input_ids.shape
    emb = (jnp.take(packed["word_emb"], input_ids, axis=0)
           + packed["pos_emb"][None, :S, :]
           + packed["type_emb"][0][None, None, :]).astype(jnp.float32)
    mask_bias = ((1.0 - attention_mask.astype(jnp.float32)) * -10000.0)[:, None, :]
    seq = encoder_stack(packed, emb, mask_bias)
    pooled = seq[:, 0, :]               # HFBertEncoder: CLS token
    return seq, pooled


# ----------------------------- BiEncoder forward --------------------------------

@jax.jit
def _forward_embs(packed_q, packed_ctx, query_ids, mask_q, ids_a, mask_a):
    _, q_embs = bert_encode(packed_q, query_ids, mask_q)
    _, a_embs = bert_encode(packed_ctx, ids_a, mask_a)
    return q_embs, a_embs


@jax.jit
def _forward_loss(packed_q, packed_ctx, query_ids, mask_q,
                  ids_a, mask_a, ids_b, mask_b):
    B = query_ids.shape[0]
    _, q_embs = bert_encode(packed_q, query_ids, mask_q)
    # ctx weights are shared for a & b -> batch both into one encoder launch.
    ids_ab = jnp.concatenate([ids_a, ids_b], axis=0)
    mask_ab = jnp.concatenate([mask_a, mask_b], axis=0)
    _, ab_embs = bert_encode(packed_ctx, ids_ab, mask_ab)
    a_embs, b_embs = ab_embs[:B], ab_embs[B:]
    # 2-way in-batch NLL loss (exactly as in the PyTorch reference); tiny -> plain JAX.
    la = jnp.sum(q_embs * a_embs, axis=-1)
    lb = jnp.sum(q_embs * b_embs, axis=-1)
    lsm = jax.nn.log_softmax(jnp.stack([la, lb], axis=1), axis=1)
    return -jnp.mean(lsm[:, 0])


def biencoder_forward(packed_q, packed_ctx, query_ids, attention_mask_q,
                      input_ids_a=None, attention_mask_a=None,
                      input_ids_b=None, attention_mask_b=None):
    if input_ids_b is None:
        return _forward_embs(packed_q, packed_ctx, query_ids, attention_mask_q,
                             input_ids_a, attention_mask_a)
    loss = _forward_loss(packed_q, packed_ctx, query_ids, attention_mask_q,
                         input_ids_a, attention_mask_a,
                         input_ids_b, attention_mask_b)
    return (loss,)


# ----------------------------- parameter init / packing -------------------------

def init_encoder_params(key):
    H, I = CFG["hidden"], CFG["intermediate"]
    keys = iter(jax.random.split(key, 64))

    def norm(shape):
        return 0.02 * jax.random.normal(next(keys), shape, dtype=jnp.float32)

    params = {
        "word_emb": norm((CFG["vocab"], H)),
        "pos_emb": norm((CFG["max_pos"], H)),
        "type_emb": norm((2, H)),
        "emb_ln_g": jnp.ones((H,), jnp.float32),
        "emb_ln_b": jnp.zeros((H,), jnp.float32),
        "layers": [],
    }
    for _ in range(CFG["layers"]):
        params["layers"].append({
            "wq": norm((H, H)), "bq": jnp.zeros((H,), jnp.float32),
            "wk": norm((H, H)), "bk": jnp.zeros((H,), jnp.float32),
            "wv": norm((H, H)), "bv": jnp.zeros((H,), jnp.float32),
            "wo": norm((H, H)), "bo": jnp.zeros((H,), jnp.float32),
            "ln1_g": jnp.ones((H,), jnp.float32),
            "ln1_b": jnp.zeros((H,), jnp.float32),
            "w1": norm((H, I)), "b1": jnp.zeros((I,), jnp.float32),
            "w2": norm((I, H)), "b2": jnp.zeros((H,), jnp.float32),
            "ln2_g": jnp.ones((H,), jnp.float32),
            "ln2_b": jnp.zeros((H,), jnp.float32),
        })
    return params


def pack_encoder_params(raw):
    """One-time re-layout into the kernel's fused, bf16, low-input-count format."""
    H, I = CFG["hidden"], CFG["intermediate"]
    L, nH, dh = CFG["layers"], CFG["heads"], CFG["head_dim"]
    assert nH * dh == H
    scale = 1.0 / math.sqrt(dh)

    def stack(key):
        return jnp.stack([lyr[key] for lyr in raw["layers"]])

    # Fold the softmax 1/sqrt(dh) scale into Wq / bq.
    wq = stack("wq") * scale
    bq = stack("bq") * scale
    # Fused QKV slab: (L, H, 3H) bf16 (MXU-native, half the VMEM / DMA bytes).
    wqkv = jnp.concatenate([wq, stack("wk"), stack("wv")], axis=2).astype(jnp.bfloat16)
    bqkv = jnp.concatenate([bq, stack("bk"), stack("bv")], axis=1).reshape(L, 1, 3 * H)

    # All (H,)-wide LN/bias vectors packed into one slab:
    # row 0: emb_ln_g, row 1: emb_ln_b, then per layer [bo, ln1_g, ln1_b, b2, ln2_g, ln2_b].
    vec_rows = [raw["emb_ln_g"], raw["emb_ln_b"]]
    for lyr in raw["layers"]:
        vec_rows += [lyr["bo"], lyr["ln1_g"], lyr["ln1_b"],
                     lyr["b2"], lyr["ln2_g"], lyr["ln2_b"]]
    vecs = jnp.stack(vec_rows).astype(jnp.float32)           # (2 + 6L, H)

    return {
        "word_emb": raw["word_emb"],
        "pos_emb": raw["pos_emb"],
        "type_emb": raw["type_emb"],
        "wqkv": wqkv,                                          # (L, H, 3H) bf16
        "bqkv": bqkv.astype(jnp.float32),                      # (L, 1, 3H) f32
        "wo": stack("wo").astype(jnp.bfloat16),                # (L, H, H)  bf16
        "w1": stack("w1").astype(jnp.bfloat16),                # (L, H, I)  bf16
        "b1": stack("b1").reshape(L, 1, I).astype(jnp.float32),
        "w2": stack("w2").astype(jnp.bfloat16),                # (L, I, H)  bf16
        "vecs": vecs,                                          # (2+6L, H)  f32
    }


# ----------------------------- main ---------------------------------------------

if __name__ == "__main__":
    B, S = 2, 8
    root = jax.random.PRNGKey(0)
    k_qenc, k_cenc, k_q, k_a, k_b = jax.random.split(root, 5)

    packed_q = pack_encoder_params(init_encoder_params(k_qenc))      # question_model
    packed_ctx = pack_encoder_params(init_encoder_params(k_cenc))    # ctx_model (shared a/b)

    query_ids = jax.random.randint(k_q, (B, S), 0, CFG["vocab"], dtype=jnp.int32)
    input_ids_a = jax.random.randint(k_a, (B, S), 0, CFG["vocab"], dtype=jnp.int32)
    input_ids_b = jax.random.randint(k_b, (B, S), 0, CFG["vocab"], dtype=jnp.int32)

    attention_mask_q = jnp.ones((B, S), jnp.int32)
    attention_mask_a = jnp.ones((B, S), jnp.int32).at[:, -1].set(0)   # exercise masking
    attention_mask_b = jnp.ones((B, S), jnp.int32).at[:, -2:].set(0)

    # Path 1: no negatives -> (q_embs, a_embs)
    q_embs, a_embs = biencoder_forward(packed_q, packed_ctx,
                                       query_ids, attention_mask_q,
                                       input_ids_a, attention_mask_a)
    jax.block_until_ready((q_embs, a_embs))
    assert q_embs.shape == (B, CFG["hidden"]) and a_embs.shape == (B, CFG["hidden"])

    # Path 2: with negatives -> (loss,)
    (loss,) = biencoder_forward(packed_q, packed_ctx,
                                query_ids, attention_mask_q,
                                input_ids_a, attention_mask_a,
                                input_ids_b, attention_mask_b)
    jax.block_until_ready(loss)
    assert loss.shape == () and bool(jnp.isfinite(loss))

    print("KERNEL_OK")
</pallas_src>

<mosaic_0001>
module attributes {stable_mosaic.version = 11 : i64} {
  func.func @_encoder_kernel(%arg0: i32, %arg1: memref<1x8x32xf32, #tpu.memory_space<vmem>>, %arg2: memref<1x1x8xf32, #tpu.memory_space<vmem>>, %arg3: memref<2x32x96xbf16, #tpu.memory_space<vmem>>, %arg4: memref<2x1x96xf32, #tpu.memory_space<vmem>>, %arg5: memref<2x32x32xbf16, #tpu.memory_space<vmem>>, %arg6: memref<2x32x64xbf16, #tpu.memory_space<vmem>>, %arg7: memref<2x1x64xf32, #tpu.memory_space<vmem>>, %arg8: memref<2x64x32xbf16, #tpu.memory_space<vmem>>, %arg9: memref<14x32xf32, #tpu.memory_space<vmem>>, %arg10: memref<1x8x32xf32, #tpu.memory_space<vmem>>) attributes {dimension_semantics = [#tpu.dimension_semantics<parallel>], iteration_bounds = array<i64: 2>, scalar_prefetch = 0 : i64, scratch_operands = 0 : i64, tpu.core_type = #tpu.core_type<tc>, window_params = [{transform_indices = @transform_0, window_bounds = array<i64: 1, 8, 32>}, {transform_indices = @transform_1, window_bounds = array<i64: 1, 1, 8>}, {pipeline_mode = #tpu.pipeline_mode<synchronous>, transform_indices = @transform_2, window_bounds = array<i64: 2, 32, 96>}, {pipeline_mode = #tpu.pipeline_mode<synchronous>, transform_indices = @transform_3, window_bounds = array<i64: 2, 1, 96>}, {pipeline_mode = #tpu.pipeline_mode<synchronous>, transform_indices = @transform_4, window_bounds = array<i64: 2, 32, 32>}, {pipeline_mode = #tpu.pipeline_mode<synchronous>, transform_indices = @transform_5, window_bounds = array<i64: 2, 32, 64>}, {pipeline_mode = #tpu.pipeline_mode<synchronous>, transform_indices = @transform_6, window_bounds = array<i64: 2, 1, 64>}, {pipeline_mode = #tpu.pipeline_mode<synchronous>, transform_indices = @transform_7, window_bounds = array<i64: 2, 64, 32>}, {pipeline_mode = #tpu.pipeline_mode<synchronous>, transform_indices = @transform_8, window_bounds = array<i64: 14, 32>}, {transform_indices = @transform_9, window_bounds = array<i64: 1, 8, 32>}]} {
    %c0 = arith.constant 0 : index
    %c0_0 = arith.constant 0 : index
    %c0_1 = arith.constant 0 : index
    %0 = vector.load %arg1[%c0, %c0_0, %c0_1] : memref<1x8x32xf32, #tpu.memory_space<vmem>>, vector<1x8x32xf32>
    %1 = vector.shape_cast %0 : vector<1x8x32xf32> to vector<8x32xf32>
    %c0_2 = arith.constant 0 : index
    %c0_3 = arith.constant 0 : index
    %c0_4 = arith.constant 0 : index
    %2 = vector.load %arg2[%c0_2, %c0_3, %c0_4] : memref<1x1x8xf32, #tpu.memory_space<vmem>>, vector<1x1x8xf32>
    %c0_5 = arith.constant 0 : index
    %c0_6 = arith.constant 0 : index
    %3 = vector.load %arg9[%c0_5, %c0_6] : memref<14x32xf32, #tpu.memory_space<vmem>>, vector<14x32xf32>
    %4 = vector.extract_strided_slice %3 {offsets = [0, 0], sizes = [1, 32], strides = [1, 1]} : vector<14x32xf32> to vector<1x32xf32>
    %5 = vector.extract_strided_slice %3 {offsets = [1, 0], sizes = [1, 32], strides = [1, 1]} : vector<14x32xf32> to vector<1x32xf32>
    %cst = arith.constant dense<0.000000e+00> : vector<8xf32>
    %6 = vector.multi_reduction <add>, %1, %cst [1] : vector<8x32xf32> to vector<8xf32>
    %7 = vector.shape_cast %6 : vector<8xf32> to vector<8x1xf32>
    %cst_7 = arith.constant 3.200000e+01 : f32
    %8 = vector.broadcast %cst_7 : f32 to vector<8x1xf32>
    %9 = arith.divf %7, %8 : vector<8x1xf32>
    %10 = vector.broadcast %9 : vector<8x1xf32> to vector<8x32xf32>
    %11 = arith.subf %1, %10 : vector<8x32xf32>
    %12 = arith.mulf %11, %11 : vector<8x32xf32>
    %cst_8 = arith.constant dense<0.000000e+00> : vector<8xf32>
    %13 = vector.multi_reduction <add>, %12, %cst_8 [1] : vector<8x32xf32> to vector<8xf32>
    %14 = vector.shape_cast %13 : vector<8xf32> to vector<8x1xf32>
    %cst_9 = arith.constant 3.200000e+01 : f32
    %15 = vector.broadcast %cst_9 : f32 to vector<8x1xf32>
    %16 = arith.divf %14, %15 : vector<8x1xf32>
    %17 = vector.broadcast %9 : vector<8x1xf32> to vector<8x32xf32>
    %18 = arith.subf %1, %17 : vector<8x32xf32>
    %cst_10 = arith.constant 9.99999996E-13 : f32
    %19 = vector.broadcast %cst_10 : f32 to vector<8x1xf32>
    %20 = arith.addf %16, %19 : vector<8x1xf32>
    %21 = math.rsqrt %20 : vector<8x1xf32>
    %22 = vector.broadcast %21 : vector<8x1xf32> to vector<8x32xf32>
    %23 = arith.mulf %18, %22 : vector<8x32xf32>
    %24 = vector.broadcast %4 : vector<1x32xf32> to vector<8x32xf32>
    %25 = arith.mulf %23, %24 : vector<8x32xf32>
    %26 = vector.broadcast %5 : vector<1x32xf32> to vector<8x32xf32>
    %27 = arith.addf %25, %26 : vector<8x32xf32>
    %28 = vector.extract_strided_slice %3 {offsets = [2, 0], sizes = [1, 32], strides = [1, 1]} : vector<14x32xf32> to vector<1x32xf32>
    %29 = vector.extract_strided_slice %3 {offsets = [3, 0], sizes = [1, 32], strides = [1, 1]} : vector<14x32xf32> to vector<1x32xf32>
    %30 = vector.extract_strided_slice %3 {offsets = [4, 0], sizes = [1, 32], strides = [1, 1]} : vector<14x32xf32> to vector<1x32xf32>
    %31 = vector.extract_strided_slice %3 {offsets = [5, 0], sizes = [1, 32], strides = [1, 1]} : vector<14x32xf32> to vector<1x32xf32>
    %32 = vector.extract_strided_slice %3 {offsets = [6, 0], sizes = [1, 32], strides = [1, 1]} : vector<14x32xf32> to vector<1x32xf32>
    %33 = vector.extract_strided_slice %3 {offsets = [7, 0], sizes = [1, 32], strides = [1, 1]} : vector<14x32xf32> to vector<1x32xf32>
    %34 = arith.truncf %27 : vector<8x32xf32> to vector<8x32xbf16>
    %c0_11 = arith.constant 0 : index
    %c0_12 = arith.constant 0 : index
    %c0_13 = arith.constant 0 : index
    %35 = vector.load %arg3[%c0_11, %c0_12, %c0_13] : memref<2x32x96xbf16, #tpu.memory_space<vmem>>, vector<1x32x96xbf16>
    %36 = vector.shape_cast %35 : vector<1x32x96xbf16> to vector<32x96xbf16>
    %cst_14 = arith.constant dense<0.000000e+00> : vector<8x96xf32>
    %37 = tpu.matmul %34, %36, %cst_14 {dimension_numbers = #tpu.dot_dimension_numbers<[1], [0], [0], [1], [0, 0, 1, 1], [], []>} : vector<8x32xbf16>, vector<32x96xbf16>, vector<8x96xf32> -> vector<8x96xf32>
    %c0_15 = arith.constant 0 : index
    %c0_16 = arith.constant 0 : index
    %c0_17 = arith.constant 0 : index
    %38 = vector.load %arg4[%c0_15, %c0_16, %c0_17] : memref<2x1x96xf32, #tpu.memory_space<vmem>>, vector<1x1x96xf32>
    %39 = vector.shape_cast %38 : vector<1x1x96xf32> to vector<1x96xf32>
    %40 = vector.broadcast %39 : vector<1x96xf32> to vector<8x96xf32>
    %41 = arith.addf %37, %40 : vector<8x96xf32>
    %42 = vector.shape_cast %41 : vector<8x96xf32> to vector<1x8x96xf32>
    %43 = vector.extract_strided_slice %42 {offsets = [0, 0, 0], sizes = [1, 8, 8], strides = [1, 1, 1]} : vector<1x8x96xf32> to vector<1x8x8xf32>
    %44 = vector.extract_strided_slice %42 {offsets = [0, 0, 32], sizes = [1, 8, 8], strides = [1, 1, 1]} : vector<1x8x96xf32> to vector<1x8x8xf32>
    %45 = vector.extract_strided_slice %42 {offsets = [0, 0, 64], sizes = [1, 8, 8], strides = [1, 1, 1]} : vector<1x8x96xf32> to vector<1x8x8xf32>
    "tpu.trace_start"() <{level = 10 : i32, message = "bqd,bkd->bqk"}> : () -> ()
    %cst_18 = arith.constant dense<0.000000e+00> : vector<1x8x8xf32>
    %46 = tpu.matmul %43, %44, %cst_18 {dimension_numbers = #tpu.dot_dimension_numbers<[2], [2], [1], [1], [0, 0, 0, 1, 1, 1], [0], [0]>} : vector<1x8x8xf32>, vector<1x8x8xf32>, vector<1x8x8xf32> -> vector<1x8x8xf32>
    "tpu.trace_stop"() : () -> ()
    %47 = vector.broadcast %2 : vector<1x1x8xf32> to vector<1x8x8xf32>
    %48 = arith.addf %46, %47 : vector<1x8x8xf32>
    %cst_19 = arith.constant dense<0xFF800000> : vector<1x8xf32>
    %49 = vector.multi_reduction <maximumf>, %48, %cst_19 [2] : vector<1x8x8xf32> to vector<1x8xf32>
    %50 = vector.shape_cast %49 : vector<1x8xf32> to vector<1x8x1xf32>
    %51 = vector.broadcast %50 : vector<1x8x1xf32> to vector<1x8x8xf32>
    %52 = arith.subf %48, %51 : vector<1x8x8xf32>
    %53 = math.exp %52 : vector<1x8x8xf32>
    %cst_20 = arith.constant dense<0.000000e+00> : vector<1x8xf32>
    %54 = vector.multi_reduction <add>, %53, %cst_20 [2] : vector<1x8x8xf32> to vector<1x8xf32>
    %55 = vector.shape_cast %54 : vector<1x8xf32> to vector<1x8x1xf32>
    %56 = tpu.reciprocal %55 {approx = true} : vector<1x8x1xf32> -> vector<1x8x1xf32>
    %57 = vector.broadcast %56 : vector<1x8x1xf32> to vector<1x8x8xf32>
    %58 = arith.mulf %53, %57 : vector<1x8x8xf32>
    "tpu.trace_start"() <{level = 10 : i32, message = "bqk,bkd->bqd"}> : () -> ()
    %cst_21 = arith.constant dense<0.000000e+00> : vector<1x8x8xf32>
    %59 = tpu.matmul %58, %45, %cst_21 {dimension_numbers = #tpu.dot_dimension_numbers<[2], [1], [1], [2], [0, 0, 0, 1, 1, 2], [0], [0]>} : vector<1x8x8xf32>, vector<1x8x8xf32>, vector<1x8x8xf32> -> vector<1x8x8xf32>
    "tpu.trace_stop"() : () -> ()
    %60 = vector.extract_strided_slice %42 {offsets = [0, 0, 8], sizes = [1, 8, 8], strides = [1, 1, 1]} : vector<1x8x96xf32> to vector<1x8x8xf32>
    %61 = vector.extract_strided_slice %42 {offsets = [0, 0, 40], sizes = [1, 8, 8], strides = [1, 1, 1]} : vector<1x8x96xf32> to vector<1x8x8xf32>
    %62 = vector.extract_strided_slice %42 {offsets = [0, 0, 72], sizes = [1, 8, 8], strides = [1, 1, 1]} : vector<1x8x96xf32> to vector<1x8x8xf32>
    "tpu.trace_start"() <{level = 10 : i32, message = "bqd,bkd->bqk"}> : () -> ()
    %cst_22 = arith.constant dense<0.000000e+00> : vector<1x8x8xf32>
    %63 = tpu.matmul %60, %61, %cst_22 {dimension_numbers = #tpu.dot_dimension_numbers<[2], [2], [1], [1], [0, 0, 0, 1, 1, 1], [0], [0]>} : vector<1x8x8xf32>, vector<1x8x8xf32>, vector<1x8x8xf32> -> vector<1x8x8xf32>
    "tpu.trace_stop"() : () -> ()
    %64 = vector.broadcast %2 : vector<1x1x8xf32> to vector<1x8x8xf32>
    %65 = arith.addf %63, %64 : vector<1x8x8xf32>
    %cst_23 = arith.constant dense<0xFF800000> : vector<1x8xf32>
    %66 = vector.multi_reduction <maximumf>, %65, %cst_23 [2] : vector<1x8x8xf32> to vector<1x8xf32>
    %67 = vector.shape_cast %66 : vector<1x8xf32> to vector<1x8x1xf32>
    %68 = vector.broadcast %67 : vector<1x8x1xf32> to vector<1x8x8xf32>
    %69 = arith.subf %65, %68 : vector<1x8x8xf32>
    %70 = math.exp %69 : vector<1x8x8xf32>
    %cst_24 = arith.constant dense<0.000000e+00> : vector<1x8xf32>
    %71 = vector.multi_reduction <add>, %70, %cst_24 [2] : vector<1x8x8xf32> to vector<1x8xf32>
    %72 = vector.shape_cast %71 : vector<1x8xf32> to vector<1x8x1xf32>
    %73 = tpu.reciprocal %72 {approx = true} : vector<1x8x1xf32> -> vector<1x8x1xf32>
    %74 = vector.broadcast %73 : vector<1x8x1xf32> to vector<1x8x8xf32>
    %75 = arith.mulf %70, %74 : vector<1x8x8xf32>
    "tpu.trace_start"() <{level = 10 : i32, message = "bqk,bkd->bqd"}> : () -> ()
    %cst_25 = arith.constant dense<0.000000e+00> : vector<1x8x8xf32>
    %76 = tpu.matmul %75, %62, %cst_25 {dimension_numbers = #tpu.dot_dimension_numbers<[2], [1], [1], [2], [0, 0, 0, 1, 1, 2], [0], [0]>} : vector<1x8x8xf32>, vector<1x8x8xf32>, vector<1x8x8xf32> -> vector<1x8x8xf32>
    "tpu.trace_stop"() : () -> ()
    %77 = vector.extract_strided_slice %42 {offsets = [0, 0, 16], sizes = [1, 8, 8], strides = [1, 1, 1]} : vector<1x8x96xf32> to vector<1x8x8xf32>
    %78 = vector.extract_strided_slice %42 {offsets = [0, 0, 48], sizes = [1, 8, 8], strides = [1, 1, 1]} : vector<1x8x96xf32> to vector<1x8x8xf32>
    %79 = vector.extract_strided_slice %42 {offsets = [0, 0, 80], sizes = [1, 8, 8], strides = [1, 1, 1]} : vector<1x8x96xf32> to vector<1x8x8xf32>
    "tpu.trace_start"() <{level = 10 : i32, message = "bqd,bkd->bqk"}> : () -> ()
    %cst_26 = arith.constant dense<0.000000e+00> : vector<1x8x8xf32>
    %80 = tpu.matmul %77, %78, %cst_26 {dimension_numbers = #tpu.dot_dimension_numbers<[2], [2], [1], [1], [0, 0, 0, 1, 1, 1], [0], [0]>} : vector<1x8x8xf32>, vector<1x8x8xf32>, vector<1x8x8xf32> -> vector<1x8x8xf32>
    "tpu.trace_stop"() : () -> ()
    %81 = vector.broadcast %2 : vector<1x1x8xf32> to vector<1x8x8xf32>
    %82 = arith.addf %80, %81 : vector<1x8x8xf32>
    %cst_27 = arith.constant dense<0xFF800000> : vector<1x8xf32>
    %83 = vector.multi_reduction <maximumf>, %82, %cst_27 [2] : vector<1x8x8xf32> to vector<1x8xf32>
    %84 = vector.shape_cast %83 : vector<1x8xf32> to vector<1x8x1xf32>
    %85 = vector.broadcast %84 : vector<1x8x1xf32> to vector<1x8x8xf32>
    %86 = arith.subf %82, %85 : vector<1x8x8xf32>
    %87 = math.exp %86 : vector<1x8x8xf32>
    %cst_28 = arith.constant dense<0.000000e+00> : vector<1x8xf32>
    %88 = vector.multi_reduction <add>, %87, %cst_28 [2] : vector<1x8x8xf32> to vector<1x8xf32>
    %89 = vector.shape_cast %88 : vector<1x8xf32> to vector<1x8x1xf32>
    %90 = tpu.reciprocal %89 {approx = true} : vector<1x8x1xf32> -> vector<1x8x1xf32>
    %91 = vector.broadcast %90 : vector<1x8x1xf32> to vector<1x8x8xf32>
    %92 = arith.mulf %87, %91 : vector<1x8x8xf32>
    "tpu.trace_start"() <{level = 10 : i32, message = "bqk,bkd->bqd"}> : () -> ()
    %cst_29 = arith.constant dense<0.000000e+00> : vector<1x8x8xf32>
    %93 = tpu.matmul %92, %79, %cst_29 {dimension_numbers = #tpu.dot_dimension_numbers<[2], [1], [1], [2], [0, 0, 0, 1, 1, 2], [0], [0]>} : vector<1x8x8xf32>, vector<1x8x8xf32>, vector<1x8x8xf32> -> vector<1x8x8xf32>
    "tpu.trace_stop"() : () -> ()
    %94 = vector.extract_strided_slice %42 {offsets = [0, 0, 24], sizes = [1, 8, 8], strides = [1, 1, 1]} : vector<1x8x96xf32> to vector<1x8x8xf32>
    %95 = vector.extract_strided_slice %42 {offsets = [0, 0, 56], sizes = [1, 8, 8], strides = [1, 1, 1]} : vector<1x8x96xf32> to vector<1x8x8xf32>
    %96 = vector.extract_strided_slice %42 {offsets = [0, 0, 88], sizes = [1, 8, 8], strides = [1, 1, 1]} : vector<1x8x96xf32> to vector<1x8x8xf32>
    "tpu.trace_start"() <{level = 10 : i32, message = "bqd,bkd->bqk"}> : () -> ()
    %cst_30 = arith.constant dense<0.000000e+00> : vector<1x8x8xf32>
    %97 = tpu.matmul %94, %95, %cst_30 {dimension_numbers = #tpu.dot_dimension_numbers<[2], [2], [1], [1], [0, 0, 0, 1, 1, 1], [0], [0]>} : vector<1x8x8xf32>, vector<1x8x8xf32>, vector<1x8x8xf32> -> vector<1x8x8xf32>
    "tpu.trace_stop"() : () -> ()
    %98 = vector.broadcast %2 : vector<1x1x8xf32> to vector<1x8x8xf32>
    %99 = arith.addf %97, %98 : vector<1x8x8xf32>
    %cst_31 = arith.constant dense<0xFF800000> : vector<1x8xf32>
    %100 = vector.multi_reduction <maximumf>, %99, %cst_31 [2] : vector<1x8x8xf32> to vector<1x8xf32>
    %101 = vector.shape_cast %100 : vector<1x8xf32> to vector<1x8x1xf32>
    %102 = vector.broadcast %101 : vector<1x8x1xf32> to vector<1x8x8xf32>
    %103 = arith.subf %99, %102 : vector<1x8x8xf32>
    %104 = math.exp %103 : vector<1x8x8xf32>
    %cst_32 = arith.constant dense<0.000000e+00> : vector<1x8xf32>
    %105 = vector.multi_reduction <add>, %104, %cst_32 [2] : vector<1x8x8xf32> to vector<1x8xf32>
    %106 = vector.shape_cast %105 : vector<1x8xf32> to vector<1x8x1xf32>
    %107 = tpu.reciprocal %106 {approx = true} : vector<1x8x1xf32> -> vector<1x8x1xf32>
    %108 = vector.broadcast %107 : vector<1x8x1xf32> to vector<1x8x8xf32>
    %109 = arith.mulf %104, %108 : vector<1x8x8xf32>
    "tpu.trace_start"() <{level = 10 : i32, message = "bqk,bkd->bqd"}> : () -> ()
    %cst_33 = arith.constant dense<0.000000e+00> : vector<1x8x8xf32>
    %110 = tpu.matmul %109, %96, %cst_33 {dimension_numbers = #tpu.dot_dimension_numbers<[2], [1], [1], [2], [0, 0, 0, 1, 1, 2], [0], [0]>} : vector<1x8x8xf32>, vector<1x8x8xf32>, vector<1x8x8xf32> -> vector<1x8x8xf32>
    "tpu.trace_stop"() : () -> ()
    %111 = tpu.concatenate %59, %76, %93, %110 in 2 : vector<1x8x8xf32>, vector<1x8x8xf32>, vector<1x8x8xf32>, vector<1x8x8xf32> -> vector<1x8x32xf32>
    %112 = vector.shape_cast %111 : vector<1x8x32xf32> to vector<8x32xf32>
    %113 = arith.truncf %112 : vector<8x32xf32> to vector<8x32xbf16>
    %c0_34 = arith.constant 0 : index
    %c0_35 = arith.constant 0 : index
    %c0_36 = arith.constant 0 : index
    %114 = vector.load %arg5[%c0_34, %c0_35, %c0_36] : memref<2x32x32xbf16, #tpu.memory_space<vmem>>, vector<1x32x32xbf16>
    %115 = vector.shape_cast %114 : vector<1x32x32xbf16> to vector<32x32xbf16>
    %cst_37 = arith.constant dense<0.000000e+00> : vector<8x32xf32>
    %116 = tpu.matmul %113, %115, %cst_37 {dimension_numbers = #tpu.dot_dimension_numbers<[1], [0], [0], [1], [0, 0, 1, 1], [], []>} : vector<8x32xbf16>, vector<32x32xbf16>, vector<8x32xf32> -> vector<8x32xf32>
    %117 = vector.broadcast %28 : vector<1x32xf32> to vector<8x32xf32>
    %118 = arith.addf %116, %117 : vector<8x32xf32>
    %119 = arith.addf %27, %118 : vector<8x32xf32>
    %cst_38 = arith.constant dense<0.000000e+00> : vector<8xf32>
    %120 = vector.multi_reduction <add>, %119, %cst_38 [1] : vector<8x32xf32> to vector<8xf32>
    %121 = vector.shape_cast %120 : vector<8xf32> to vector<8x1xf32>
    %cst_39 = arith.constant 3.200000e+01 : f32
    %122 = vector.broadcast %cst_39 : f32 to vector<8x1xf32>
    %123 = arith.divf %121, %122 : vector<8x1xf32>
    %124 = vector.broadcast %123 : vector<8x1xf32> to vector<8x32xf32>
    %125 = arith.subf %119, %124 : vector<8x32xf32>
    %126 = arith.mulf %125, %125 : vector<8x32xf32>
    %cst_40 = arith.constant dense<0.000000e+00> : vector<8xf32>
    %127 = vector.multi_reduction <add>, %126, %cst_40 [1] : vector<8x32xf32> to vector<8xf32>
    %128 = vector.shape_cast %127 : vector<8xf32> to vector<8x1xf32>
    %cst_41 = arith.constant 3.200000e+01 : f32
    %129 = vector.broadcast %cst_41 : f32 to vector<8x1xf32>
    %130 = arith.divf %128, %129 : vector<8x1xf32>
    %131 = vector.broadcast %123 : vector<8x1xf32> to vector<8x32xf32>
    %132 = arith.subf %119, %131 : vector<8x32xf32>
    %cst_42 = arith.constant 9.99999996E-13 : f32
    %133 = vector.broadcast %cst_42 : f32 to vector<8x1xf32>
    %134 = arith.addf %130, %133 : vector<8x1xf32>
    %135 = math.rsqrt %134 : vector<8x1xf32>
    %136 = vector.broadcast %135 : vector<8x1xf32> to vector<8x32xf32>
    %137 = arith.mulf %132, %136 : vector<8x32xf32>
    %138 = vector.broadcast %29 : vector<1x32xf32> to vector<8x32xf32>
    %139 = arith.mulf %137, %138 : vector<8x32xf32>
    %140 = vector.broadcast %30 : vector<1x32xf32> to vector<8x32xf32>
    %141 = arith.addf %139, %140 : vector<8x32xf32>
    %142 = arith.truncf %141 : vector<8x32xf32> to vector<8x32xbf16>
    %c0_43 = arith.constant 0 : index
    %c0_44 = arith.constant 0 : index
    %c0_45 = arith.constant 0 : index
    %143 = vector.load %arg6[%c0_43, %c0_44, %c0_45] : memref<2x32x64xbf16, #tpu.memory_space<vmem>>, vector<1x32x64xbf16>
    %144 = vector.shape_cast %143 : vector<1x32x64xbf16> to vector<32x64xbf16>
    %cst_46 = arith.constant dense<0.000000e+00> : vector<8x64xf32>
    %145 = tpu.matmul %142, %144, %cst_46 {dimension_numbers = #tpu.dot_dimension_numbers<[1], [0], [0], [1], [0, 0, 1, 1], [], []>} : vector<8x32xbf16>, vector<32x64xbf16>, vector<8x64xf32> -> vector<8x64xf32>
    %c0_47 = arith.constant 0 : index
    %c0_48 = arith.constant 0 : index
    %c0_49 = arith.constant 0 : index
    %146 = vector.load %arg7[%c0_47, %c0_48, %c0_49] : memref<2x1x64xf32, #tpu.memory_space<vmem>>, vector<1x1x64xf32>
    %147 = vector.shape_cast %146 : vector<1x1x64xf32> to vector<1x64xf32>
    %148 = vector.broadcast %147 : vector<1x64xf32> to vector<8x64xf32>
    %149 = arith.addf %145, %148 : vector<8x64xf32>
    %cst_50 = arith.constant 5.000000e-01 : f32
    %150 = vector.broadcast %cst_50 : f32 to vector<8x64xf32>
    %151 = arith.mulf %150, %149 : vector<8x64xf32>
    %cst_51 = arith.constant 4.471500e-02 : f32
    %152 = vector.broadcast %cst_51 : f32 to vector<8x64xf32>
    %153 = arith.mulf %152, %149 : vector<8x64xf32>
    %154 = arith.mulf %153, %149 : vector<8x64xf32>
    %155 = arith.mulf %154, %149 : vector<8x64xf32>
    %156 = arith.addf %149, %155 : vector<8x64xf32>
    %cst_52 = arith.constant 0.797884583 : f32
    %157 = vector.broadcast %cst_52 : f32 to vector<8x64xf32>
    %158 = arith.mulf %157, %156 : vector<8x64xf32>
    %159 = math.tanh %158 : vector<8x64xf32>
    %cst_53 = arith.constant 1.000000e+00 : f32
    %160 = vector.broadcast %cst_53 : f32 to vector<8x64xf32>
    %161 = arith.addf %160, %159 : vector<8x64xf32>
    %162 = arith.mulf %151, %161 : vector<8x64xf32>
    %163 = arith.truncf %162 : vector<8x64xf32> to vector<8x64xbf16>
    %c0_54 = arith.constant 0 : index
    %c0_55 = arith.constant 0 : index
    %c0_56 = arith.constant 0 : index
    %164 = vector.load %arg8[%c0_54, %c0_55, %c0_56] : memref<2x64x32xbf16, #tpu.memory_space<vmem>>, vector<1x64x32xbf16>
    %165 = vector.shape_cast %164 : vector<1x64x32xbf16> to vector<64x32xbf16>
    %cst_57 = arith.constant dense<0.000000e+00> : vector<8x32xf32>
    %166 = tpu.matmul %163, %165, %cst_57 {dimension_numbers = #tpu.dot_dimension_numbers<[1], [0], [0], [1], [0, 0, 1, 1], [], []>} : vector<8x64xbf16>, vector<64x32xbf16>, vector<8x32xf32> -> vector<8x32xf32>
    %167 = vector.broadcast %31 : vector<1x32xf32> to vector<8x32xf32>
    %168 = arith.addf %166, %167 : vector<8x32xf32>
    %169 = arith.addf %141, %168 : vector<8x32xf32>
    %cst_58 = arith.constant dense<0.000000e+00> : vector<8xf32>
    %170 = vector.multi_reduction <add>, %169, %cst_58 [1] : vector<8x32xf32> to vector<8xf32>
    %171 = vector.shape_cast %170 : vector<8xf32> to vector<8x1xf32>
    %cst_59 = arith.constant 3.200000e+01 : f32
    %172 = vector.broadcast %cst_59 : f32 to vector<8x1xf32>
    %173 = arith.divf %171, %172 : vector<8x1xf32>
    %174 = vector.broadcast %173 : vector<8x1xf32> to vector<8x32xf32>
    %175 = arith.subf %169, %174 : vector<8x32xf32>
    %176 = arith.mulf %175, %175 : vector<8x32xf32>
    %cst_60 = arith.constant dense<0.000000e+00> : vector<8xf32>
    %177 = vector.multi_reduction <add>, %176, %cst_60 [1] : vector<8x32xf32> to vector<8xf32>
    %178 = vector.shape_cast %177 : vector<8xf32> to vector<8x1xf32>
    %cst_61 = arith.constant 3.200000e+01 : f32
    %179 = vector.broadcast %cst_61 : f32 to vector<8x1xf32>
    %180 = arith.divf %178, %179 : vector<8x1xf32>
    %181 = vector.broadcast %173 : vector<8x1xf32> to vector<8x32xf32>
    %182 = arith.subf %169, %181 : vector<8x32xf32>
    %cst_62 = arith.constant 9.99999996E-13 : f32
    %183 = vector.broadcast %cst_62 : f32 to vector<8x1xf32>
    %184 = arith.addf %180, %183 : vector<8x1xf32>
    %185 = math.rsqrt %184 : vector<8x1xf32>
    %186 = vector.broadcast %185 : vector<8x1xf32> to vector<8x32xf32>
    %187 = arith.mulf %182, %186 : vector<8x32xf32>
    %188 = vector.broadcast %32 : vector<1x32xf32> to vector<8x32xf32>
    %189 = arith.mulf %187, %188 : vector<8x32xf32>
    %190 = vector.broadcast %33 : vector<1x32xf32> to vector<8x32xf32>
    %191 = arith.addf %189, %190 : vector<8x32xf32>
    %192 = vector.extract_strided_slice %3 {offsets = [8, 0], sizes = [1, 32], strides = [1, 1]} : vector<14x32xf32> to vector<1x32xf32>
    %193 = vector.extract_strided_slice %3 {offsets = [9, 0], sizes = [1, 32], strides = [1, 1]} : vector<14x32xf32> to vector<1x32xf32>
    %194 = vector.extract_strided_slice %3 {offsets = [10, 0], sizes = [1, 32], strides = [1, 1]} : vector<14x32xf32> to vector<1x32xf32>
    %195 = vector.extract_strided_slice %3 {offsets = [11, 0], sizes = [1, 32], strides = [1, 1]} : vector<14x32xf32> to vector<1x32xf32>
    %196 = vector.extract_strided_slice %3 {offsets = [12, 0], sizes = [1, 32], strides = [1, 1]} : vector<14x32xf32> to vector<1x32xf32>
    %197 = vector.extract_strided_slice %3 {offsets = [13, 0], sizes = [1, 32], strides = [1, 1]} : vector<14x32xf32> to vector<1x32xf32>
    %198 = arith.truncf %191 : vector<8x32xf32> to vector<8x32xbf16>
    %c1 = arith.constant 1 : index
    %c0_63 = arith.constant 0 : index
    %c0_64 = arith.constant 0 : index
    %199 = vector.load %arg3[%c1, %c0_63, %c0_64] : memref<2x32x96xbf16, #tpu.memory_space<vmem>>, vector<1x32x96xbf16>
    %200 = vector.shape_cast %199 : vector<1x32x96xbf16> to vector<32x96xbf16>
    %cst_65 = arith.constant dense<0.000000e+00> : vector<8x96xf32>
    %201 = tpu.matmul %198, %200, %cst_65 {dimension_numbers = #tpu.dot_dimension_numbers<[1], [0], [0], [1], [0, 0, 1, 1], [], []>} : vector<8x32xbf16>, vector<32x96xbf16>, vector<8x96xf32> -> vector<8x96xf32>
    %c1_66 = arith.constant 1 : index
    %c0_67 = arith.constant 0 : index
    %c0_68 = arith.constant 0 : index
    %202 = vector.load %arg4[%c1_66, %c0_67, %c0_68] : memref<2x1x96xf32, #tpu.memory_space<vmem>>, vector<1x1x96xf32>
    %203 = vector.shape_cast %202 : vector<1x1x96xf32> to vector<1x96xf32>
    %204 = vector.broadcast %203 : vector<1x96xf32> to vector<8x96xf32>
    %205 = arith.addf %201, %204 : vector<8x96xf32>
    %206 = vector.shape_cast %205 : vector<8x96xf32> to vector<1x8x96xf32>
    %207 = vector.extract_strided_slice %206 {offsets = [0, 0, 0], sizes = [1, 8, 8], strides = [1, 1, 1]} : vector<1x8x96xf32> to vector<1x8x8xf32>
    %208 = vector.extract_strided_slice %206 {offsets = [0, 0, 32], sizes = [1, 8, 8], strides = [1, 1, 1]} : vector<1x8x96xf32> to vector<1x8x8xf32>
    %209 = vector.extract_strided_slice %206 {offsets = [0, 0, 64], sizes = [1, 8, 8], strides = [1, 1, 1]} : vector<1x8x96xf32> to vector<1x8x8xf32>
    "tpu.trace_start"() <{level = 10 : i32, message = "bqd,bkd->bqk"}> : () -> ()
    %cst_69 = arith.constant dense<0.000000e+00> : vector<1x8x8xf32>
    %210 = tpu.matmul %207, %208, %cst_69 {dimension_numbers = #tpu.dot_dimension_numbers<[2], [2], [1], [1], [0, 0, 0, 1, 1, 1], [0], [0]>} : vector<1x8x8xf32>, vector<1x8x8xf32>, vector<1x8x8xf32> -> vector<1x8x8xf32>
    "tpu.trace_stop"() : () -> ()
    %211 = vector.broadcast %2 : vector<1x1x8xf32> to vector<1x8x8xf32>
    %212 = arith.addf %210, %211 : vector<1x8x8xf32>
    %cst_70 = arith.constant dense<0xFF800000> : vector<1x8xf32>
    %213 = vector.multi_reduction <maximumf>, %212, %cst_70 [2] : vector<1x8x8xf32> to vector<1x8xf32>
    %214 = vector.shape_cast %213 : vector<1x8xf32> to vector<1x8x1xf32>
    %215 = vector.broadcast %214 : vector<1x8x1xf32> to vector<1x8x8xf32>
    %216 = arith.subf %212, %215 : vector<1x8x8xf32>
    %217 = math.exp %216 : vector<1x8x8xf32>
    %cst_71 = arith.constant dense<0.000000e+00> : vector<1x8xf32>
    %218 = vector.multi_reduction <add>, %217, %cst_71 [2] : vector<1x8x8xf32> to vector<1x8xf32>
    %219 = vector.shape_cast %218 : vector<1x8xf32> to vector<1x8x1xf32>
    %220 = tpu.reciprocal %219 {approx = true} : vector<1x8x1xf32> -> vector<1x8x1xf32>
    %221 = vector.broadcast %220 : vector<1x8x1xf32> to vector<1x8x8xf32>
    %222 = arith.mulf %217, %221 : vector<1x8x8xf32>
    "tpu.trace_start"() <{level = 10 : i32, message = "bqk,bkd->bqd"}> : () -> ()
    %cst_72 = arith.constant dense<0.000000e+00> : vector<1x8x8xf32>
    %223 = tpu.matmul %222, %209, %cst_72 {dimension_numbers = #tpu.dot_dimension_numbers<[2], [1], [1], [2], [0, 0, 0, 1, 1, 2], [0], [0]>} : vector<1x8x8xf32>, vector<1x8x8xf32>, vector<1x8x8xf32> -> vector<1x8x8xf32>
    "tpu.trace_stop"() : () -> ()
    %224 = vector.extract_strided_slice %206 {offsets = [0, 0, 8], sizes = [1, 8, 8], strides = [1, 1, 1]} : vector<1x8x96xf32> to vector<1x8x8xf32>
    %225 = vector.extract_strided_slice %206 {offsets = [0, 0, 40], sizes = [1, 8, 8], strides = [1, 1, 1]} : vector<1x8x96xf32> to vector<1x8x8xf32>
    %226 = vector.extract_strided_slice %206 {offsets = [0, 0, 72], sizes = [1, 8, 8], strides = [1, 1, 1]} : vector<1x8x96xf32> to vector<1x8x8xf32>
    "tpu.trace_start"() <{level = 10 : i32, message = "bqd,bkd->bqk"}> : () -> ()
    %cst_73 = arith.constant dense<0.000000e+00> : vector<1x8x8xf32>
    %227 = tpu.matmul %224, %225, %cst_73 {dimension_numbers = #tpu.dot_dimension_numbers<[2], [2], [1], [1], [0, 0, 0, 1, 1, 1], [0], [0]>} : vector<1x8x8xf32>, vector<1x8x8xf32>, vector<1x8x8xf32> -> vector<1x8x8xf32>
    "tpu.trace_stop"() : () -> ()
    %228 = vector.broadcast %2 : vector<1x1x8xf32> to vector<1x8x8xf32>
    %229 = arith.addf %227, %228 : vector<1x8x8xf32>
    %cst_74 = arith.constant dense<0xFF800000> : vector<1x8xf32>
    %230 = vector.multi_reduction <maximumf>, %229, %cst_74 [2] : vector<1x8x8xf32> to vector<1x8xf32>
    %231 = vector.shape_cast %230 : vector<1x8xf32> to vector<1x8x1xf32>
    %232 = vector.broadcast %231 : vector<1x8x1xf32> to vector<1x8x8xf32>
    %233 = arith.subf %229, %232 : vector<1x8x8xf32>
    %234 = math.exp %233 : vector<1x8x8xf32>
    %cst_75 = arith.constant dense<0.000000e+00> : vector<1x8xf32>
    %235 = vector.multi_reduction <add>, %234, %cst_75 [2] : vector<1x8x8xf32> to vector<1x8xf32>
    %236 = vector.shape_cast %235 : vector<1x8xf32> to vector<1x8x1xf32>
    %237 = tpu.reciprocal %236 {approx = true} : vector<1x8x1xf32> -> vector<1x8x1xf32>
    %238 = vector.broadcast %237 : vector<1x8x1xf32> to vector<1x8x8xf32>
    %239 = arith.mulf %234, %238 : vector<1x8x8xf32>
    "tpu.trace_start"() <{level = 10 : i32, message = "bqk,bkd->bqd"}> : () -> ()
    %cst_76 = arith.constant dense<0.000000e+00> : vector<1x8x8xf32>
    %240 = tpu.matmul %239, %226, %cst_76 {dimension_numbers = #tpu.dot_dimension_numbers<[2], [1], [1], [2], [0, 0, 0, 1, 1, 2], [0], [0]>} : vector<1x8x8xf32>, vector<1x8x8xf32>, vector<1x8x8xf32> -> vector<1x8x8xf32>
    "tpu.trace_stop"() : () -> ()
    %241 = vector.extract_strided_slice %206 {offsets = [0, 0, 16], sizes = [1, 8, 8], strides = [1, 1, 1]} : vector<1x8x96xf32> to vector<1x8x8xf32>
    %242 = vector.extract_strided_slice %206 {offsets = [0, 0, 48], sizes = [1, 8, 8], strides = [1, 1, 1]} : vector<1x8x96xf32> to vector<1x8x8xf32>
    %243 = vector.extract_strided_slice %206 {offsets = [0, 0, 80], sizes = [1, 8, 8], strides = [1, 1, 1]} : vector<1x8x96xf32> to vector<1x8x8xf32>
    "tpu.trace_start"() <{level = 10 : i32, message = "bqd,bkd->bqk"}> : () -> ()
    %cst_77 = arith.constant dense<0.000000e+00> : vector<1x8x8xf32>
    %244 = tpu.matmul %241, %242, %cst_77 {dimension_numbers = #tpu.dot_dimension_numbers<[2], [2], [1], [1], [0, 0, 0, 1, 1, 1], [0], [0]>} : vector<1x8x8xf32>, vector<1x8x8xf32>, vector<1x8x8xf32> -> vector<1x8x8xf32>
    "tpu.trace_stop"() : () -> ()
    %245 = vector.broadcast %2 : vector<1x1x8xf32> to vector<1x8x8xf32>
    %246 = arith.addf %244, %245 : vector<1x8x8xf32>
    %cst_78 = arith.constant dense<0xFF800000> : vector<1x8xf32>
    %247 = vector.multi_reduction <maximumf>, %246, %cst_78 [2] : vector<1x8x8xf32> to vector<1x8xf32>
    %248 = vector.shape_cast %247 : vector<1x8xf32> to vector<1x8x1xf32>
    %249 = vector.broadcast %248 : vector<1x8x1xf32> to vector<1x8x8xf32>
    %250 = arith.subf %246, %249 : vector<1x8x8xf32>
    %251 = math.exp %250 : vector<1x8x8xf32>
    %cst_79 = arith.constant dense<0.000000e+00> : vector<1x8xf32>
    %252 = vector.multi_reduction <add>, %251, %cst_79 [2] : vector<1x8x8xf32> to vector<1x8xf32>
    %253 = vector.shape_cast %252 : vector<1x8xf32> to vector<1x8x1xf32>
    %254 = tpu.reciprocal %253 {approx = true} : vector<1x8x1xf32> -> vector<1x8x1xf32>
    %255 = vector.broadcast %254 : vector<1x8x1xf32> to vector<1x8x8xf32>
    %256 = arith.mulf %251, %255 : vector<1x8x8xf32>
    "tpu.trace_start"() <{level = 10 : i32, message = "bqk,bkd->bqd"}> : () -> ()
    %cst_80 = arith.constant dense<0.000000e+00> : vector<1x8x8xf32>
    %257 = tpu.matmul %256, %243, %cst_80 {dimension_numbers = #tpu.dot_dimension_numbers<[2], [1], [1], [2], [0, 0, 0, 1, 1, 2], [0], [0]>} : vector<1x8x8xf32>, vector<1x8x8xf32>, vector<1x8x8xf32> -> vector<1x8x8xf32>
    "tpu.trace_stop"() : () -> ()
    %258 = vector.extract_strided_slice %206 {offsets = [0, 0, 24], sizes = [1, 8, 8], strides = [1, 1, 1]} : vector<1x8x96xf32> to vector<1x8x8xf32>
    %259 = vector.extract_strided_slice %206 {offsets = [0, 0, 56], sizes = [1, 8, 8], strides = [1, 1, 1]} : vector<1x8x96xf32> to vector<1x8x8xf32>
    %260 = vector.extract_strided_slice %206 {offsets = [0, 0, 88], sizes = [1, 8, 8], strides = [1, 1, 1]} : vector<1x8x96xf32> to vector<1x8x8xf32>
    "tpu.trace_start"() <{level = 10 : i32, message = "bqd,bkd->bqk"}> : () -> ()
    %cst_81 = arith.constant dense<0.000000e+00> : vector<1x8x8xf32>
    %261 = tpu.matmul %258, %259, %cst_81 {dimension_numbers = #tpu.dot_dimension_numbers<[2], [2], [1], [1], [0, 0, 0, 1, 1, 1], [0], [0]>} : vector<1x8x8xf32>, vector<1x8x8xf32>, vector<1x8x8xf32> -> vector<1x8x8xf32>
    "tpu.trace_stop"() : () -> ()
    %262 = vector.broadcast %2 : vector<1x1x8xf32> to vector<1x8x8xf32>
    %263 = arith.addf %261, %262 : vector<1x8x8xf32>
    %cst_82 = arith.constant dense<0xFF800000> : vector<1x8xf32>
    %264 = vector.multi_reduction <maximumf>, %263, %cst_82 [2] : vector<1x8x8xf32> to vector<1x8xf32>
    %265 = vector.shape_cast %264 : vector<1x8xf32> to vector<1x8x1xf32>
    %266 = vector.broadcast %265 : vector<1x8x1xf32> to vector<1x8x8xf32>
    %267 = arith.subf %263, %266 : vector<1x8x8xf32>
    %268 = math.exp %267 : vector<1x8x8xf32>
    %cst_83 = arith.constant dense<0.000000e+00> : vector<1x8xf32>
    %269 = vector.multi_reduction <add>, %268, %cst_83 [2] : vector<1x8x8xf32> to vector<1x8xf32>
    %270 = vector.shape_cast %269 : vector<1x8xf32> to vector<1x8x1xf32>
    %271 = tpu.reciprocal %270 {approx = true} : vector<1x8x1xf32> -> vector<1x8x1xf32>
    %272 = vector.broadcast %271 : vector<1x8x1xf32> to vector<1x8x8xf32>
    %273 = arith.mulf %268, %272 : vector<1x8x8xf32>
    "tpu.trace_start"() <{level = 10 : i32, message = "bqk,bkd->bqd"}> : () -> ()
    %cst_84 = arith.constant dense<0.000000e+00> : vector<1x8x8xf32>
    %274 = tpu.matmul %273, %260, %cst_84 {dimension_numbers = #tpu.dot_dimension_numbers<[2], [1], [1], [2], [0, 0, 0, 1, 1, 2], [0], [0]>} : vector<1x8x8xf32>, vector<1x8x8xf32>, vector<1x8x8xf32> -> vector<1x8x8xf32>
    "tpu.trace_stop"() : () -> ()
    %275 = tpu.concatenate %223, %240, %257, %274 in 2 : vector<1x8x8xf32>, vector<1x8x8xf32>, vector<1x8x8xf32>, vector<1x8x8xf32> -> vector<1x8x32xf32>
    %276 = vector.shape_cast %275 : vector<1x8x32xf32> to vector<8x32xf32>
    %277 = arith.truncf %276 : vector<8x32xf32> to vector<8x32xbf16>
    %c1_85 = arith.constant 1 : index
    %c0_86 = arith.constant 0 : index
    %c0_87 = arith.constant 0 : index
    %278 = vector.load %arg5[%c1_85, %c0_86, %c0_87] : memref<2x32x32xbf16, #tpu.memory_space<vmem>>, vector<1x32x32xbf16>
    %279 = vector.shape_cast %278 : vector<1x32x32xbf16> to vector<32x32xbf16>
    %cst_88 = arith.constant dense<0.000000e+00> : vector<8x32xf32>
    %280 = tpu.matmul %277, %279, %cst_88 {dimension_numbers = #tpu.dot_dimension_numbers<[1], [0], [0], [1], [0, 0, 1, 1], [], []>} : vector<8x32xbf16>, vector<32x32xbf16>, vector<8x32xf32> -> vector<8x32xf32>
    %281 = vector.broadcast %192 : vector<1x32xf32> to vector<8x32xf32>
    %282 = arith.addf %280, %281 : vector<8x32xf32>
    %283 = arith.addf %191, %282 : vector<8x32xf32>
    %cst_89 = arith.constant dense<0.000000e+00> : vector<8xf32>
    %284 = vector.multi_reduction <add>, %283, %cst_89 [1] : vector<8x32xf32> to vector<8xf32>
    %285 = vector.shape_cast %284 : vector<8xf32> to vector<8x1xf32>
    %cst_90 = arith.constant 3.200000e+01 : f32
    %286 = vector.broadcast %cst_90 : f32 to vector<8x1xf32>
    %287 = arith.divf %285, %286 : vector<8x1xf32>
    %288 = vector.broadcast %287 : vector<8x1xf32> to vector<8x32xf32>
    %289 = arith.subf %283, %288 : vector<8x32xf32>
    %290 = arith.mulf %289, %289 : vector<8x32xf32>
    %cst_91 = arith.constant dense<0.000000e+00> : vector<8xf32>
    %291 = vector.multi_reduction <add>, %290, %cst_91 [1] : vector<8x32xf32> to vector<8xf32>
    %292 = vector.shape_cast %291 : vector<8xf32> to vector<8x1xf32>
    %cst_92 = arith.constant 3.200000e+01 : f32
    %293 = vector.broadcast %cst_92 : f32 to vector<8x1xf32>
    %294 = arith.divf %292, %293 : vector<8x1xf32>
    %295 = vector.broadcast %287 : vector<8x1xf32> to vector<8x32xf32>
    %296 = arith.subf %283, %295 : vector<8x32xf32>
    %cst_93 = arith.constant 9.99999996E-13 : f32
    %297 = vector.broadcast %cst_93 : f32 to vector<8x1xf32>
    %298 = arith.addf %294, %297 : vector<8x1xf32>
    %299 = math.rsqrt %298 : vector<8x1xf32>
    %300 = vector.broadcast %299 : vector<8x1xf32> to vector<8x32xf32>
    %301 = arith.mulf %296, %300 : vector<8x32xf32>
    %302 = vector.broadcast %193 : vector<1x32xf32> to vector<8x32xf32>
    %303 = arith.mulf %301, %302 : vector<8x32xf32>
    %304 = vector.broadcast %194 : vector<1x32xf32> to vector<8x32xf32>
    %305 = arith.addf %303, %304 : vector<8x32xf32>
    %306 = arith.truncf %305 : vector<8x32xf32> to vector<8x32xbf16>
    %c1_94 = arith.constant 1 : index
    %c0_95 = arith.constant 0 : index
    %c0_96 = arith.constant 0 : index
    %307 = vector.load %arg6[%c1_94, %c0_95, %c0_96] : memref<2x32x64xbf16, #tpu.memory_space<vmem>>, vector<1x32x64xbf16>
    %308 = vector.shape_cast %307 : vector<1x32x64xbf16> to vector<32x64xbf16>
    %cst_97 = arith.constant dense<0.000000e+00> : vector<8x64xf32>
    %309 = tpu.matmul %306, %308, %cst_97 {dimension_numbers = #tpu.dot_dimension_numbers<[1], [0], [0], [1], [0, 0, 1, 1], [], []>} : vector<8x32xbf16>, vector<32x64xbf16>, vector<8x64xf32> -> vector<8x64xf32>
    %c1_98 = arith.constant 1 : index
    %c0_99 = arith.constant 0 : index
    %c0_100 = arith.constant 0 : index
    %310 = vector.load %arg7[%c1_98, %c0_99, %c0_100] : memref<2x1x64xf32, #tpu.memory_space<vmem>>, vector<1x1x64xf32>
    %311 = vector.shape_cast %310 : vector<1x1x64xf32> to vector<1x64xf32>
    %312 = vector.broadcast %311 : vector<1x64xf32> to vector<8x64xf32>
    %313 = arith.addf %309, %312 : vector<8x64xf32>
    %cst_101 = arith.constant 5.000000e-01 : f32
    %314 = vector.broadcast %cst_101 : f32 to vector<8x64xf32>
    %315 = arith.mulf %314, %313 : vector<8x64xf32>
    %cst_102 = arith.constant 4.471500e-02 : f32
    %316 = vector.broadcast %cst_102 : f32 to vector<8x64xf32>
    %317 = arith.mulf %316, %313 : vector<8x64xf32>
    %318 = arith.mulf %317, %313 : vector<8x64xf32>
    %319 = arith.mulf %318, %313 : vector<8x64xf32>
    %320 = arith.addf %313, %319 : vector<8x64xf32>
    %cst_103 = arith.constant 0.797884583 : f32
    %321 = vector.broadcast %cst_103 : f32 to vector<8x64xf32>
    %322 = arith.mulf %321, %320 : vector<8x64xf32>
    %323 = math.tanh %322 : vector<8x64xf32>
    %cst_104 = arith.constant 1.000000e+00 : f32
    %324 = vector.broadcast %cst_104 : f32 to vector<8x64xf32>
    %325 = arith.addf %324, %323 : vector<8x64xf32>
    %326 = arith.mulf %315, %325 : vector<8x64xf32>
    %327 = arith.truncf %326 : vector<8x64xf32> to vector<8x64xbf16>
    %c1_105 = arith.constant 1 : index
    %c0_106 = arith.constant 0 : index
    %c0_107 = arith.constant 0 : index
    %328 = vector.load %arg8[%c1_105, %c0_106, %c0_107] : memref<2x64x32xbf16, #tpu.memory_space<vmem>>, vector<1x64x32xbf16>
    %329 = vector.shape_cast %328 : vector<1x64x32xbf16> to vector<64x32xbf16>
    %cst_108 = arith.constant dense<0.000000e+00> : vector<8x32xf32>
    %330 = tpu.matmul %327, %329, %cst_108 {dimension_numbers = #tpu.dot_dimension_numbers<[1], [0], [0], [1], [0, 0, 1, 1], [], []>} : vector<8x64xbf16>, vector<64x32xbf16>, vector<8x32xf32> -> vector<8x32xf32>
    %331 = vector.broadcast %195 : vector<1x32xf32> to vector<8x32xf32>
    %332 = arith.addf %330, %331 : vector<8x32xf32>
    %333 = arith.addf %305, %332 : vector<8x32xf32>
    %cst_109 = arith.constant dense<0.000000e+00> : vector<8xf32>
    %334 = vector.multi_reduction <add>, %333, %cst_109 [1] : vector<8x32xf32> to vector<8xf32>
    %335 = vector.shape_cast %334 : vector<8xf32> to vector<8x1xf32>
    %cst_110 = arith.constant 3.200000e+01 : f32
    %336 = vector.broadcast %cst_110 : f32 to vector<8x1xf32>
    %337 = arith.divf %335, %336 : vector<8x1xf32>
    %338 = vector.broadcast %337 : vector<8x1xf32> to vector<8x32xf32>
    %339 = arith.subf %333, %338 : vector<8x32xf32>
    %340 = arith.mulf %339, %339 : vector<8x32xf32>
    %cst_111 = arith.constant dense<0.000000e+00> : vector<8xf32>
    %341 = vector.multi_reduction <add>, %340, %cst_111 [1] : vector<8x32xf32> to vector<8xf32>
    %342 = vector.shape_cast %341 : vector<8xf32> to vector<8x1xf32>
    %cst_112 = arith.constant 3.200000e+01 : f32
    %343 = vector.broadcast %cst_112 : f32 to vector<8x1xf32>
    %344 = arith.divf %342, %343 : vector<8x1xf32>
    %345 = vector.broadcast %337 : vector<8x1xf32> to vector<8x32xf32>
    %346 = arith.subf %333, %345 : vector<8x32xf32>
    %cst_113 = arith.constant 9.99999996E-13 : f32
    %347 = vector.broadcast %cst_113 : f32 to vector<8x1xf32>
    %348 = arith.addf %344, %347 : vector<8x1xf32>
    %349 = math.rsqrt %348 : vector<8x1xf32>
    %350 = vector.broadcast %349 : vector<8x1xf32> to vector<8x32xf32>
    %351 = arith.mulf %346, %350 : vector<8x32xf32>
    %352 = vector.broadcast %196 : vector<1x32xf32> to vector<8x32xf32>
    %353 = arith.mulf %351, %352 : vector<8x32xf32>
    %354 = vector.broadcast %197 : vector<1x32xf32> to vector<8x32xf32>
    %355 = arith.addf %353, %354 : vector<8x32xf32>
    %356 = vector.shape_cast %355 : vector<8x32xf32> to vector<1x8x32xf32>
    %c0_114 = arith.constant 0 : index
    %c0_115 = arith.constant 0 : index
    %c0_116 = arith.constant 0 : index
    %357 = vector.load %arg10[%c0_114, %c0_115, %c0_116] : memref<1x8x32xf32, #tpu.memory_space<vmem>>, vector<1x8x32xf32>
    tpu.vector_store %arg10[%c0_114, %c0_115, %c0_116], %356 {strides = array<i32>} : memref<1x8x32xf32, #tpu.memory_space<vmem>>, vector<1x8x32xf32>,
    return
  }
  func.func @transform_0(%arg0: i32) -> (i32, i32, i32) {
    %c0_i32 = arith.constant 0 : i32
    %c0_i32_0 = arith.constant 0 : i32
    %c0_i32_1 = arith.constant 0 : i32
    return %arg0, %c0_i32, %c0_i32_0 : i32, i32, i32
  }
  func.func @transform_1(%arg0: i32) -> (i32, i32, i32) {
    %c0_i32 = arith.constant 0 : i32
    %c0_i32_0 = arith.constant 0 : i32
    %c0_i32_1 = arith.constant 0 : i32
    return %arg0, %c0_i32, %c0_i32_0 : i32, i32, i32
  }
  func.func @transform_2(%arg0: i32) -> (i32, i32, i32) {
    %c0_i32 = arith.constant 0 : i32
    %c0_i32_0 = arith.constant 0 : i32
    %c0_i32_1 = arith.constant 0 : i32
    %c0_i32_2 = arith.constant 0 : i32
    return %c0_i32, %c0_i32_0, %c0_i32_1 : i32, i32, i32
  }
  func.func @transform_3(%arg0: i32) -> (i32, i32, i32) {
    %c0_i32 = arith.constant 0 : i32
    %c0_i32_0 = arith.constant 0 : i32
    %c0_i32_1 = arith.constant 0 : i32
    %c0_i32_2 = arith.constant 0 : i32
    return %c0_i32, %c0_i32_0, %c0_i32_1 : i32, i32, i32
  }
  func.func @transform_4(%arg0: i32) -> (i32, i32, i32) {
    %c0_i32 = arith.constant 0 : i32
    %c0_i32_0 = arith.constant 0 : i32
    %c0_i32_1 = arith.constant 0 : i32
    %c0_i32_2 = arith.constant 0 : i32
    return %c0_i32, %c0_i32_0, %c0_i32_1 : i32, i32, i32
  }
  func.func @transform_5(%arg0: i32) -> (i32, i32, i32) {
    %c0_i32 = arith.constant 0 : i32
    %c0_i32_0 = arith.constant 0 : i32
    %c0_i32_1 = arith.constant 0 : i32
    %c0_i32_2 = arith.constant 0 : i32
    return %c0_i32, %c0_i32_0, %c0_i32_1 : i32, i32, i32
  }
  func.func @transform_6(%arg0: i32) -> (i32, i32, i32) {
    %c0_i32 = arith.constant 0 : i32
    %c0_i32_0 = arith.constant 0 : i32
    %c0_i32_1 = arith.constant 0 : i32
    %c0_i32_2 = arith.constant 0 : i32
    return %c0_i32, %c0_i32_0, %c0_i32_1 : i32, i32, i32
  }
  func.func @transform_7(%arg0: i32) -> (i32, i32, i32) {
    %c0_i32 = arith.constant 0 : i32
    %c0_i32_0 = arith.constant 0 : i32
    %c0_i32_1 = arith.constant 0 : i32
    %c0_i32_2 = arith.constant 0 : i32
    return %c0_i32, %c0_i32_0, %c0_i32_1 : i32, i32, i32
  }
  func.func @transform_8(%arg0: i32) -> (i32, i32) {
    %c0_i32 = arith.constant 0 : i32
    %c0_i32_0 = arith.constant 0 : i32
    %c0_i32_1 = arith.constant 0 : i32
    return %c0_i32, %c0_i32_0 : i32, i32
  }
  func.func @transform_9(%arg0: i32) -> (i32, i32, i32) {
    %c0_i32 = arith.constant 0 : i32
    %c0_i32_0 = arith.constant 0 : i32
    %c0_i32_1 = arith.constant 0 : i32
    return %arg0, %c0_i32, %c0_i32_0 : i32, i32, i32
  }
}

</mosaic_0001>

<bundles_post_ra>
// kernel: _forward_embs.2
= control target key start
LH: loop header
LB: loop body
LE: loop exit
PB: predicated region body
PF: predicated region fallthrough
CT: control target
= control target key end

     0   :  { %s1759_s30 = smov 0   ;;  %s2044_s0 = inlined_call_operand.vmem [shape: f32[2,8,32], index: 0, kind: input, shape index: {}]   ;;  %s2045_s1 = inlined_call_operand.vmem [shape: f32[2,1,8], index: 1, kind: input, shape index: {}]   ;;  %s2046_s2 = inlined_call_operand.vmem [shape: bf16[2,32,96], index: 2, kind: input, shape index: {}]   ;;  %s2047_s3 = inlined_call_operand.vmem [shape: f32[2,1,96], index: 3, kind: input, shape index: {}]   ;;  %s2048_s4 = inlined_call_operand.vmem [shape: bf16[2,32,32], index: 4, kind: input, shape index: {}]   ;;  %s2049_s5 = inlined_call_operand.vmem [shape: bf16[2,32,64], index: 5, kind: input, shape index: {}]   ;;  %s2050_s6 = inlined_call_operand.vmem [shape: f32[2,1,64], index: 6, kind: input, shape index: {}]   ;;  %s2051_s7 = inlined_call_operand.vmem [shape: bf16[2,64,32], index: 7, kind: input, shape index: {}]   ;;  %s2052_s8 = inlined_call_operand.vmem [shape: f32[14,32], index: 8, kind: input, shape index: {}]   ;;  %s2053_s9 = inlined_call_operand.vmem [shape: f32[2,8,32], index: 9, kind: output, shape index: {}]  }
   0x1 LB: > { %s1447_s10 = sadd.s32 4294967295, %s1692_s30   ;;  %p1451_p0 = scmp.ge.s32.totalorder %s1692_s30, 1  ;;  %s1692_s30 = sphi %s1759_s30, %s19_s30  }
   0x2   : > { %p294_p1 = scmp.lt.s32.totalorder %s1692_s30, 3 }
   0x4   : > { %p295_p2 = pnand %p1451_p0, %p294_p1 }
   0x5   : > { %p331_p3 = scmp.lt.s32.totalorder (!%p295_p2), %s1447_s10, 1  ;;  %s1695_s26 = smov (!%p295_p2), 64  }
   0x6   : > { %298 = sbr.rel (%p295_p2) target bundleno = 4776 (0x12a8), region = 56  ;;  %s1696_s27 = smov (!%p295_p2), 120  }
   0x7   : > { %s1697_s28 = smov (!%p295_p2), 96   ;;  %s1698_s29 = smov (!%p295_p2), 80  }
   0x8   : > { %s1699_s12 = smov (!%p295_p2), 88   ;;  %s1700_s16 = smov (!%p295_p2), 56  }
   0x9   : > { %s1703_s18 = smov (!%p295_p2), 104   ;;  %s2057_s19 = smov (!%p295_p2), 8  }
   0xa   : > { %s2058_s20 = smov (!%p295_p2), 48   ;;  %s2059_s21 = smov (!%p295_p2), 40  }
   0xb   : > { %s2067_s10 = smov (!%p331_p3, %s1447_s10), 1  ;;  %vm347_vm0 = vcmask 261120   ;;  %v1694_v2 = vmov 32.0   ;;  %v1591_v14 = vld [vmem:[%s2046_s2 + $0x8] sm:$0xff]  ;;  %v1590_v15 = vld [vmem:[%s2046_s2] sm:$0xff]  ;;  %vm424_vm5 = vcmask 64512  }
   0xc   : > { %s2054_s11 = sshll.u32 %s2067_s10, 3  ;;  %s337_s14 = scalar_lea.vmem %s2045_s1, %s2067_s10  ;;  %1638 = vrcp.f32 %v1694_v2  ;;  %411 = vmatpush.bf16.msra.mxu0 %v1591_v14  ;;  %v1794_v24 = vld [vmem:[%s2052_s8] sm:$0xff]  ;;  %vm694_vm6 = vcmask 130048   ;;  %vm696_vm7 = vcmask 195584   ;;  %vm839_vm11 = vcmask 523264  }
   0xd   : > { %s334_s17 = scalar_lea.vmem %s2044_s0, %s2054_s11  ;;  %v377_v26 = vperm.slane %v1794_v24, 0  ;;  %v379_v29 = vperm.slane %v1794_v24, 1  ;;  %v1634_v33 = vld [vmem:[%s2047_s3] ss:$0 sm:$0xff]  ;;  %s2056_s22 = smov 16  }
   0xe   : > { %v343_v0 = vld [vmem:[%s334_s17] sm:$0xff]  ;;  %s1701_s17 = smov 112   ;;  %s2055_s25 = smov 24  }
   0xf   : > { %v348_v1 = vsel %vm347_vm0, %v343_v0, 0.0  ;;  %v1829_v42 = vld [vmem:[%s337_s14] ss:$0 sm:$0xff]  ;;  %s1702_s14 = smov 72  }
  0x10   : > { %349 = vadd.xlane.f32.xlu0 %v348_v1  ;;  %412 = vmatpush.bf16.msra.mxu0 %v1590_v15 }
  0x12   : > { %v1639_v3 = vpop.eup %1638 }
  0x13   : > { %v352_v4 = vmul.f32 32.0, %v1639_v3  ;;  %vm356_vm1 = vweird.f32 %v1639_v3 }
  0x15   : > { %v353_v5 = vsub.f32 1.0, %v352_v4 }
  0x17   : > { %v354_v6 = vmul.f32 %v1639_v3, %v353_v5 }
  0x19   : > { %v355_v7 = vadd.f32 %v1639_v3, %v354_v6 }
  0x1b   : > { %v1780_v8 = vsel %vm356_vm1, %v1639_v3, %v355_v7 }
  0x83   : > { %v350_v9 = vpop.xlane.xlu0 %349 }
  0x84   : > { %v358_v10 = vmul.f32 %v1780_v8, %v350_v9 }
  0x86   : > { %v359_v11 = vsub.f32 %v343_v0, %v358_v10 }
  0x88   : > { %v360_v12 = vmul.f32 %v359_v11, %v359_v11 }
  0x8a   : > { %v361_v13 = vsel %vm347_vm0, %v360_v12, 0.0 }
  0x8b   : > { %362 = vadd.xlane.f32.xlu0 %v361_v13 }
  0xfe   : > { %v363_v16 = vpop.xlane.xlu0 %362 }
  0xff   : > { %v364_v17 = vmul.f32 %v363_v16, %v1780_v8 }
 0x101   : > { %v365_v18 = vadd.f32 1e-12, %v364_v17 }
 0x103   : > { %1640 = vrsqrt.f32 %v365_v18  ;;  %vm372_vm3 = vweird.f32 %v365_v18 }
 0x109   : > { %v1641_v19 = vpop.eup %1640 }
 0x10a   : > { %v367_v20 = vmul.f32 %v1641_v19, %v365_v18  ;;  %vm373_vm2 = vweird.f32 %v1641_v19 }
 0x10b   : > { %vm374_vm4 = vmor %vm372_vm3, %vm373_vm2 }
 0x10c   : > { %v368_v21 = vmul.f32 %v1641_v19, %v367_v20 }
 0x10e   : > { %v369_v22 = vmul.f32 0.5, %v368_v21 }
 0x110   : > { %v370_v23 = vsub.f32 1.5, %v369_v22 }
 0x112   : > { %v371_v25 = vmul.f32 %v1641_v19, %v370_v23 }
 0x114   : > { %v375_v27 = vsel %vm374_vm4, %v1641_v19, %v371_v25 }
 0x115   : > { %v376_v28 = vmul.f32 %v375_v27, %v359_v11 }
 0x117   : > { %v378_v30 = vmul.f32 %v377_v26, %v376_v28 }
 0x119   : > { %v1798_v31 = vadd.f32 %v379_v29, %v378_v30 }
 0x11b   : > { %v381_v32 = vpack.c.bf16 %v1798_v31, %v1798_v31 }
 0x11d   : > { %1462 = vmatmul.msk.bf16.vlgmr.msra.gmra.mxu0 %vm347_vm0, %v381_v32 }
 0x19a   : > { %v414_v34 = vpop.f32.mrf.mxu0 }
 0x19b   : > { %v1806_v35 = vadd.f32 %v1634_v33, %v414_v34 }
 0x19d   : > { %460 = vrot.lane.b32.xlu0 %v1806_v35, %s1695_s26  ;;  %486 = vrot.lane.b32.xlu2 %v1806_v35, %s1696_s27 }
 0x19e   : > { %422 = vrot.lane.b32.xlu1 %v1806_v35, %s1697_s28 }
 0x1a2   : > { %v416_v36 = vpop.f32.mrf.mxu0 }
 0x1a3   : > { %v1593_v36 = vld [vmem:[%s2048_s4 + $0x8] sm:$0xff] }
 0x1a5   : > { %553 = vrot.lane.b32.xlu0 %v1806_v35, %s1698_s29 }
 0x1a6   : > { %488 = vrot.lane.b32.xlu1 %v1806_v35, %s1699_s12 }
 0x1f7   : > { %v487_v41 = vpop.permute.xlu2 %486 }
 0x20f   : > { %v461_v37 = vpop.permute.xlu0 %460 }
 0x210   : > { %v423_v38 = vpop.permute.xlu1 %422  ;;  %481 = vmatpush.msra.mxu2 %v461_v37 }
 0x211   : > { %1463 = vmatpush.xpose.msk.msra.mxu3 %vm424_vm5, %v423_v38 }
 0x214   : > { %1464 = vmatmul.msk.f32.vlgmr.msra.gmra.mxu3 %vm424_vm5, %v1806_v35 }
 0x217   : > { %v554_v39 = vpop.permute.xlu0 %553 }
 0x218   : > { %v489_v40 = vpop.permute.xlu1 %488  ;;  %1469 = vmatpush.xpose.msk.msra.mxu1 %vm424_vm5, %v554_v39 }
 0x219   : > { %1466 = vmatpush.xpose.msk.msrb.mxu3 %vm424_vm5, %v489_v40 }
 0x21c   : > { %1467 = vmatmul.msk.f32.vlgmr.msrb.gmra.mxu3 %vm424_vm5, %v487_v41 }
 0x297   : > { %v446_v43 = vpop.f32.mrf.mxu3 }
 0x298   : > { %v447_v44 = vadd.f32 %v1829_v42, %v446_v43 }
 0x29a   : > { %v449_v45 = vsel %vm424_vm5, %v447_v44, -inf }
 0x29b   : > { %450 = vmax.xlane.f32.xlu2 %v449_v45 }
 0x29f   : > { %v511_v46 = vpop.f32.mrf.mxu3 }
 0x2a0   : > { %v512_v47 = vadd.f32 %v1829_v42, %v511_v46  ;;  %v703_v46 = vperm.slane %v1794_v24, 2 }
 0x2a2   : > { %v514_v48 = vsel %vm424_vm5, %v512_v47, -inf }
 0x2a3   : > { %515 = vmax.xlane.f32.xlu0 %v514_v48 }
 0x2b3   : > { %525 = vrot.lane.b32.xlu2 %v1806_v35, %s1700_s16 }
 0x2b7   : > { %551 = vrot.lane.b32.xlu0 %v1806_v35, %s1701_s17 }
 0x30e   : > { %v451_v49 = vpop.xlane.xlu2 %450 }
 0x30f   : > { %v452_v50 = vsub.f32 %v447_v44, %v451_v49 }
 0x311   : > { %v453_v51 = vmul.f32 1.442695, %v452_v50 }
 0x313   : > { %1642 = vpow2.f32 %v453_v51 }
 0x316   : > { %v526_v52 = vpop.permute.xlu2 %525  ;;  %v516_v53 = vpop.xlane.xlu0 %515 }
 0x317   : > { %v517_v54 = vsub.f32 %v512_v47, %v516_v53  ;;  %546 = vmatpush.msrb.mxu2 %v526_v52 }
 0x319   : > { %v1643_v55 = vpop.eup %1642  ;;  %v518_v56 = vmul.f32 1.442695, %v517_v54 }
 0x31a   : > { %v455_v57 = vsel %vm424_vm5, %v1643_v55, 0.0 }
 0x31b   : > { %1644 = vpow2.f32 %v518_v56  ;;  %456 = vadd.xlane.f32.xlu1 %v455_v57  ;;  %v1595_v57 = vld [vmem:[%s2049_s5 + $0x8] sm:$0xff] }
 0x31c   : > { %789 = vmatpush.bf16.msrb.mxu0 %v1595_v57 }
 0x321   : > { %v1645_v58 = vpop.eup %1644 }
 0x322   : > { %v520_v59 = vsel %vm424_vm5, %v1645_v58, 0.0 }
 0x323   : > { %521 = vadd.xlane.f32.xlu0 %v520_v59 }
 0x329   : > { %v552_v60 = vpop.permute.xlu0 %551 }
 0x32a   : > { %1470 = vmatmul.msk.f32.vlgmr.msra.gmra.mxu1 %vm424_vm5, %v552_v60 }
 0x334   : > { %618 = vrot.lane.b32.xlu1 %v1806_v35, %s1702_s14 }
 0x337   : > { %616 = vrot.lane.b32.xlu0 %v1806_v35, %s1703_s18 }
 0x38e   : > { %v457_v61 = vpop.xlane.xlu1 %456 }
 0x38f   : > { %1646 = vrcp.f32 %v457_v61 }
 0x395   : > { %v1647_v62 = vpop.eup %1646 }
 0x396   : > { %v522_v63 = vpop.xlane.xlu0 %521  ;;  %v459_v0 = vmul.f32 %v1647_v62, %v1643_v55 }
 0x397   : > { %1648 = vrcp.f32 %v522_v63 }
 0x398   : > { %1465 = vmatmul.msk.f32.vlgmr.msra.gmra.mxu2 %vm424_vm5, %v459_v0 }
 0x39d   : > { %v1649_v1 = vpop.eup %1648 }
 0x39e   : > { %v524_v2 = vmul.f32 %v1649_v1, %v1645_v58 }
 0x3a0   : > { %1468 = vmatmul.msk.f32.vlgmr.msrb.gmra.mxu2 %vm424_vm5, %v524_v2 }
 0x3a6   : > { %v619_v3 = vpop.permute.xlu1 %618 }
 0x3a7   : > { %v576_v4 = vpop.f32.mrf.mxu1  ;;  %1472 = vmatpush.xpose.msk.msra.mxu2 %vm424_vm5, %v619_v3  ;;  %v755_v3 = vperm.slane %v1794_v24, 3 }
 0x3a8   : > { %v577_v5 = vadd.f32 %v1829_v42, %v576_v4 }
 0x3a9   : > { %v617_v6 = vpop.permute.xlu0 %616 }
 0x3aa   : > { %1473 = vmatmul.msk.f32.vlgmr.msra.gmra.mxu2 %vm424_vm5, %v617_v6  ;;  %v579_v7 = vsel %vm424_vm5, %v577_v5, -inf  ;;  %v757_v6 = vperm.slane %v1794_v24, 4 }
 0x3ab   : > { %580 = vmax.xlane.f32.xlu2 %v579_v7 }
 0x41b   : > { %v483_v9 = vpop.f32.mrf.mxu2 }
 0x41e   : > { %v581_v10 = vpop.xlane.xlu2 %580 }
 0x41f   : > { %v582_v11 = vsub.f32 %v577_v5, %v581_v10 }
 0x421   : > { %v583_v12 = vmul.f32 1.442695, %v582_v11  ;;  %v1599_v11 = vld [vmem:[%s2051_s7 + $0x18] sm:$0xff] }
 0x422   : > { %847 = vmatpush.bf16.msrb.mxu2 %v1599_v11 }
 0x423   : > { %1650 = vpow2.f32 %v583_v12  ;;  %v548_v13 = vpop.f32.mrf.mxu2  ;;  %v1598_v12 = vld [vmem:[%s2051_s7 + $0x10] sm:$0xff] }
 0x426   : > { %848 = vmatpush.bf16.msrb.mxu2 %v1598_v12 }
 0x429   : > { %v1651_v14 = vpop.eup %1650 }
 0x42a   : > { %v585_v15 = vsel %vm424_vm5, %v1651_v14, 0.0 }
 0x42b   : > { %586 = vadd.xlane.f32.xlu1 %v585_v15  ;;  %v1635_v15 = vld [vmem:[%s2050_s6] ss:$0 sm:$0xff] }
 0x42d   : > { %v641_v16 = vpop.f32.mrf.mxu2 }
 0x42e   : > { %v642_v17 = vadd.f32 %v1829_v42, %v641_v16 }
 0x430   : > { %v644_v18 = vsel %vm424_vm5, %v642_v17, -inf }
 0x431   : > { %645 = vmax.xlane.f32.xlu0 %v644_v18 }
 0x444   : > { %682 = vrot.lane.b32.xlu1 %v548_v13, %s2057_s19  ;;  %v1597_v13 = vld [vmem:[%s2051_s7 + $0x8] sm:$0xff] }
 0x445   : > { %590 = vrot.lane.b32.xlu0 %v1806_v35, %s2058_s20  ;;  %849 = vmatpush.bf16.msrb.mxu2 %v1597_v13 }
 0x49e   : > { %v587_v22 = vpop.xlane.xlu1 %586 }
 0x4a4   : > { %v646_v19 = vpop.xlane.xlu0 %645 }
 0x4a5   : > { %v647_v20 = vsub.f32 %v642_v17, %v646_v19 }
 0x4a7   : > { %v648_v21 = vmul.f32 1.442695, %v647_v20 }
 0x4a9   : > { %1652 = vpow2.f32 %v648_v21 }
 0x4aa   : > { %1654 = vrcp.f32 %v587_v22 }
 0x4af   : > { %v1653_v23 = vpop.eup %1652 }
 0x4b0   : > { %v650_v25 = vsel %vm424_vm5, %v1653_v23, 0.0  ;;  %v1655_v26 = vpop.eup %1654 }
 0x4b1   : > { %651 = vadd.xlane.f32.xlu2 %v650_v25  ;;  %v589_v27 = vmul.f32 %v1655_v26, %v1651_v14  ;;  %v1596_v14 = vld [vmem:[%s2051_s7] sm:$0xff] }
 0x4b2   : > { %850 = vmatpush.bf16.msrb.mxu2 %v1596_v14 }
 0x4b6   : > { %v683_v39 = vpop.permute.xlu1 %682 }
 0x4b7   : > { %v591_v28 = vpop.permute.xlu0 %590  ;;  %v693_v40 = vsel %vm424_vm5, %v483_v9, %v683_v39 }
 0x4b8   : > { %611 = vmatpush.msra.mxu3 %v591_v28 }
 0x4b9   : > { %1471 = vmatmul.msk.f32.vlgmr.msra.gmra.mxu3 %vm424_vm5, %v589_v27 }
 0x4ba   : > { %725 = vmatpush.bf16.msrb.mxu3 %v1593_v36 }
 0x4c9   : > { %655 = vrot.lane.b32.xlu2 %v1806_v35, %s2059_s21  ;;  %v1592_v35 = vld [vmem:[%s2048_s4] sm:$0xff] }
 0x4ca   : > { %726 = vmatpush.bf16.msrb.mxu3 %v1592_v35 }
 0x524   : > { %v652_v29 = vpop.xlane.xlu2 %651 }
 0x525   : > { %1656 = vrcp.f32 %v652_v29 }
 0x52b   : > { %v1657_v30 = vpop.eup %1656 }
 0x52c   : > { %v656_v32 = vpop.permute.xlu2 %655  ;;  %v654_v33 = vmul.f32 %v1657_v30, %v1653_v23  ;;  %v814_v30 = vperm.slane %v1794_v24, 5 }
 0x52d   : > { %676 = vmatpush.msrb.mxu1 %v656_v32 }
 0x52e   : > { %1474 = vmatmul.msk.f32.vlgmr.msrb.gmra.mxu1 %vm424_vm5, %v654_v33 }
 0x53c   : > { %v613_v34 = vpop.f32.mrf.mxu3 }
 0x53d   : > { %686 = vrot.lane.b32.xlu0 %v613_v34, %s2056_s22 }
 0x5ab   : > { %v678_v37 = vpop.f32.mrf.mxu1 }
 0x5ac   : > { %690 = vrot.lane.b32.xlu0 %v678_v37, %s2055_s25 }
 0x5af   : > { %v687_v38 = vpop.permute.xlu0 %686 }
 0x5b0   : > { %v695_v41 = vsel %vm694_vm6, %v693_v40, %v687_v38 }
 0x61e   : > { %v691_v43 = vpop.permute.xlu0 %690 }
 0x61f   : > { %v697_v44 = vsel %vm696_vm7, %v695_v41, %v691_v43  ;;  %v1601_v43 = vld [vmem:[%s2046_s2 + $0x18] sm:$0xff] }
 0x620   : > { %v698_v45 = vpack.c.bf16 %v697_v44, %v697_v44  ;;  %915 = vmatpush.bf16.msra.mxu1 %v1601_v43  ;;  %v1600_v44 = vld [vmem:[%s2046_s2 + $0x10] sm:$0xff] }
 0x622   : > { %1483 = vmatmul.msk.bf16.vlgmr.msrb.gmra.mxu3 %vm347_vm0, %v698_v45 }
 0x624   : > { %916 = vmatpush.bf16.msra.mxu1 %v1600_v44 }
 0x6a5   : > { %v728_v47 = vpop.f32.mrf.mxu3 }
 0x6a6   : > { %v729_v48 = vadd.f32 %v728_v47, %v703_v46 }
 0x6a8   : > { %v732_v49 = vadd.f32 %v729_v48, %v1798_v31  ;;  %v1594_v31 = vld [vmem:[%s2049_s5] sm:$0xff] }
 0x6a9   : > { %790 = vmatpush.bf16.msrb.mxu0 %v1594_v31 }
 0x6aa   : > { %v733_v50 = vsel %vm347_vm0, %v732_v49, 0.0 }
 0x6ab   : > { %734 = vadd.xlane.f32.xlu2 %v733_v50 }
 0x6ad   : > { %v730_v51 = vpop.f32.mrf.mxu3 }
 0x71e   : > { %v735_v52 = vpop.xlane.xlu2 %734 }
 0x71f   : > { %v736_v53 = vmul.f32 %v735_v52, %v1780_v8 }
 0x721   : > { %v737_v54 = vsub.f32 %v732_v49, %v736_v53 }
 0x723   : > { %v738_v55 = vmul.f32 %v737_v54, %v737_v54 }
 0x725   : > { %v739_v56 = vsel %vm347_vm0, %v738_v55, 0.0 }
 0x726   : > { %740 = vadd.xlane.f32.xlu1 %v739_v56  ;;  %v881_v56 = vperm.slane %v1794_v24, 7 }
 0x799   : > { %v741_v58 = vpop.xlane.xlu1 %740 }
 0x79a   : > { %v742_v59 = vmul.f32 %v741_v58, %v1780_v8 }
 0x79c   : > { %v743_v60 = vadd.f32 1e-12, %v742_v59 }
 0x79e   : > { %1658 = vrsqrt.f32 %v743_v60  ;;  %vm750_vm9 = vweird.f32 %v743_v60 }
 0x7a4   : > { %v1659_v61 = vpop.eup %1658 }
 0x7a5   : > { %v745_v62 = vmul.f32 %v1659_v61, %v743_v60  ;;  %vm751_vm8 = vweird.f32 %v1659_v61  ;;  %v1636_v60 = vld [vmem:[%s2047_s3 + $0x1] ss:$0 sm:$0xff] }
 0x7a6   : > { %vm752_vm10 = vmor %vm750_vm9, %vm751_vm8 }
 0x7a7   : > { %v746_v63 = vmul.f32 %v1659_v61, %v745_v62 }
 0x7a9   : > { %v747_v0 = vmul.f32 0.5, %v746_v63 }
 0x7ab   : > { %v748_v1 = vsub.f32 1.5, %v747_v0 }
 0x7ad   : > { %v749_v2 = vmul.f32 %v1659_v61, %v748_v1 }
 0x7af   : > { %v753_v4 = vsel %vm752_vm10, %v1659_v61, %v749_v2 }
 0x7b0   : > { %v754_v5 = vmul.f32 %v753_v4, %v737_v54  ;;  %v879_v54 = vperm.slane %v1794_v24, 6 }
 0x7b2   : > { %v756_v7 = vmul.f32 %v755_v3, %v754_v5 }
 0x7b4   : > { %v758_v9 = vadd.f32 %v757_v6, %v756_v7 }
 0x7b6   : > { %v759_v10 = vpack.c.bf16 %v758_v9, %v758_v9 }
 0x7b8   : > { %1492 = vmatmul.msk.bf16.vlgmr.msrb.gmra.mxu0 %vm347_vm0, %v759_v10 }
 0x835   : > { %v792_v16 = vpop.f32.mrf.mxu0 }
 0x836   : > { %v793_v17 = vadd.f32 %v1635_v15, %v792_v16 }
 0x838   : > { %v797_v18 = vmul.f32 0.044715, %v793_v17  ;;  %v796_v26 = vmul.f32 0.5, %v793_v17 }
 0x83a   : > { %v798_v19 = vmul.f32 %v797_v18, %v793_v17 }
 0x83c   : > { %v799_v20 = vmul.f32 %v798_v19, %v793_v17 }
 0x83d   : > { %v794_v21 = vpop.f32.mrf.mxu0 }
 0x83e   : > { %v800_v22 = vadd.f32 %v799_v20, %v793_v17 }
 0x840   : > { %v801_v23 = vmul.f32 0.7978846, %v800_v22 }
 0x842   : > { %1660 = vtanh.f32 %v801_v23 }
 0x848   : > { %v1661_v25 = vpop.eup %1660 }
 0x849   : > { %v803_v27 = vadd.f32 1.0, %v1661_v25 }
 0x84b   : > { %v804_v28 = vmul.f32 %v803_v27, %v796_v26 }
 0x84d   : > { %v805_v29 = vpack.c.bf16 %v804_v28, %v804_v28 }
 0x84f   : > { %1509 = vmatmul.msk.bf16.vlgmr.msrb.gmra.mxu2 %vm839_vm11, %v805_v29 }
 0x8d2   : > { %v852_v32 = vpop.f32.mrf.mxu2 }
 0x8d3   : > { %v853_v33 = vadd.f32 %v852_v32, %v814_v30 }
 0x8d5   : > { %v856_v34 = vadd.f32 %v853_v33, %v758_v9 }
 0x8d7   : > { %v857_v36 = vsel %vm347_vm0, %v856_v34, 0.0 }
 0x8d8   : > { %858 = vadd.xlane.f32.xlu0 %v857_v36 }
 0x8da   : > { %v854_v37 = vpop.f32.mrf.mxu2 }
 0x94b   : > { %v859_v35 = vpop.xlane.xlu0 %858 }
 0x94c   : > { %v860_v38 = vmul.f32 %v859_v35, %v1780_v8 }
 0x94e   : > { %v861_v39 = vsub.f32 %v856_v34, %v860_v38 }
 0x950   : > { %v862_v40 = vmul.f32 %v861_v39, %v861_v39 }
 0x952   : > { %v863_v41 = vsel %vm347_vm0, %v862_v40, 0.0 }
 0x953   : > { %864 = vadd.xlane.f32.xlu2 %v863_v41 }
 0x9c6   : > { %v865_v45 = vpop.xlane.xlu2 %864 }
 0x9c7   : > { %v866_v46 = vmul.f32 %v865_v45, %v1780_v8 }
 0x9c9   : > { %v867_v47 = vadd.f32 1e-12, %v866_v46 }
 0x9cb   : > { %1662 = vrsqrt.f32 %v867_v47  ;;  %vm874_vm13 = vweird.f32 %v867_v47 }
 0x9d1   : > { %v1663_v48 = vpop.eup %1662 }
 0x9d2   : > { %v869_v49 = vmul.f32 %v1663_v48, %v867_v47  ;;  %vm875_vm12 = vweird.f32 %v1663_v48 }
 0x9d3   : > { %vm876_vm14 = vmor %vm874_vm13, %vm875_vm12 }
 0x9d4   : > { %v870_v50 = vmul.f32 %v1663_v48, %v869_v49 }
 0x9d6   : > { %v871_v51 = vmul.f32 0.5, %v870_v50 }
 0x9d8   : > { %v872_v52 = vsub.f32 1.5, %v871_v51 }
 0x9da   : > { %v873_v53 = vmul.f32 %v1663_v48, %v872_v52 }
 0x9dc   : > { %v877_v55 = vsel %vm876_vm14, %v1663_v48, %v873_v53 }
 0x9dd   : > { %v878_v57 = vmul.f32 %v877_v55, %v861_v39 }
 0x9df   : > { %v880_v31 = vmul.f32 %v879_v54, %v878_v57 }
 0x9e1   : > { %v1919_v58 = vadd.f32 %v881_v56, %v880_v31 }
 0x9e3   : > { %v883_v59 = vpack.c.bf16 %v1919_v58, %v1919_v58 }
 0x9e5   : > { %1523 = vmatmul.msk.bf16.vlgmr.msra.gmra.mxu1 %vm347_vm0, %v883_v59 }
 0xa62   : > { %v918_v61 = vpop.f32.mrf.mxu1 }
 0xa63   : > { %v1927_v62 = vadd.f32 %v1636_v60, %v918_v61  ;;  %v1603_v61 = vld [vmem:[%s2048_s4 + $0x18] sm:$0xff] }
 0xa65   : > { %960 = vrot.lane.b32.xlu0 %v1927_v62, %s1695_s26  ;;  %923 = vrot.lane.b32.xlu1 %v1927_v62, %s1697_s28  ;;  %s2060_s26 = smov 40   ;;  %s2062_s28 = smov 8  }
 0xa6a   : > { %v920_v24 = vpop.f32.mrf.mxu1 }
 0xa6d   : > { %1053 = vrot.lane.b32.xlu0 %v1927_v62, %s1698_s29  ;;  %986 = vrot.lane.b32.xlu1 %v1927_v62, %s1696_s27  ;;  %s2061_s27 = smov 48   ;;  %s2063_s29 = smov 16  }
 0xa75   : > { %1118 = vrot.lane.b32.xlu1 %v1927_v62, %s1702_s14 }
 0xad7   : > { %v961_v63 = vpop.permute.xlu0 %960  ;;  %v924_v0 = vpop.permute.xlu1 %923 }
 0xad8   : > { %1524 = vmatpush.xpose.msk.msra.mxu3 %vm424_vm5, %v924_v0  ;;  %981 = vmatpush.msra.mxu0 %v961_v63 }
 0xadb   : > { %1525 = vmatmul.msk.f32.vlgmr.msra.gmra.mxu3 %vm424_vm5, %v1927_v62 }
 0xadf   : > { %v1054_v1 = vpop.permute.xlu0 %1053  ;;  %v987_v5 = vpop.permute.xlu1 %986 }
 0xae0   : > { %1530 = vmatpush.xpose.msk.msrb.mxu0 %vm424_vm5, %v1054_v1 }
 0xae7   : > { %v1119_v11 = vpop.permute.xlu1 %1118 }
 0xb5e   : > { %v946_v2 = vpop.f32.mrf.mxu3 }
 0xb5f   : > { %v947_v3 = vadd.f32 %v1829_v42, %v946_v2 }
 0xb61   : > { %v949_v4 = vsel %vm424_vm5, %v947_v3, -inf }
 0xb62   : > { %950 = vmax.xlane.f32.xlu2 %v949_v4 }
 0xb7a   : > { %988 = vrot.lane.b32.xlu2 %v1927_v62, %s1699_s12  ;;  %s2064_s12 = smov 24  }
 0xb82   : > { %1051 = vrot.lane.b32.xlu2 %v1927_v62, %s1701_s17  ;;  %s2065_s17 = sshll.u32 %s2067_s10, 3 }
 0xb83   : > { %s341_s23 = scalar_lea.vmem %s2053_s9, %s2065_s17 }
 0xbd5   : > { %v951_v6 = vpop.xlane.xlu2 %950 }
 0xbd6   : > { %v952_v7 = vsub.f32 %v947_v3, %v951_v6 }
 0xbd8   : > { %v953_v9 = vmul.f32 1.442695, %v952_v7 }
 0xbda   : > { %1664 = vpow2.f32 %v953_v9 }
 0xbdd   : > { %v989_v10 = vpop.permute.xlu2 %988 }
 0xbde   : > { %1527 = vmatpush.xpose.msk.msrb.mxu1 %vm424_vm5, %v989_v10 }
 0xbe0   : > { %v1665_v12 = vpop.eup %1664 }
 0xbe1   : > { %1528 = vmatmul.msk.f32.vlgmr.msrb.gmra.mxu1 %vm424_vm5, %v987_v5  ;;  %v955_v13 = vsel %vm424_vm5, %v1665_v12, 0.0  ;;  %v1995_v5 = vld [vmem:[%s2052_s8 + $0x8] sm:$0x3f] }
 0xbe2   : > { %1533 = vmatpush.xpose.msk.msra.mxu1 %vm424_vm5, %v1119_v11  ;;  %956 = vadd.xlane.f32.xlu0 %v955_v13  ;;  %v1202_v6 = vperm.slane %v1995_v5, 0 }
 0xbe5   : > { %v1052_v20 = vpop.permute.xlu2 %1051 }
 0xbf6   : > { %1116 = vrot.lane.b32.xlu0 %v1927_v62, %s1703_s18 }
 0xc55   : > { %v957_v14 = vpop.xlane.xlu0 %956 }
 0xc56   : > { %1666 = vrcp.f32 %v957_v14 }
 0xc5c   : > { %v1667_v15 = vpop.eup %1666 }
 0xc5d   : > { %v959_v16 = vmul.f32 %v1667_v15, %v1665_v12 }
 0xc5e   : > { %v1011_v17 = vpop.f32.mrf.mxu1 }
 0xc5f   : > { %v1012_v18 = vadd.f32 %v1829_v42, %v1011_v17  ;;  %1526 = vmatmul.msk.f32.vlgmr.msra.gmra.mxu0 %vm424_vm5, %v959_v16 }
 0xc60   : > { %1224 = vmatpush.bf16.msra.mxu0 %v1603_v61 }
 0xc61   : > { %v1014_v19 = vsel %vm424_vm5, %v1012_v18, -inf }
 0xc62   : > { %1015 = vmax.xlane.f32.xlu1 %v1014_v19 }
 0xc67   : > { %1531 = vmatmul.msk.f32.vlgmr.msrb.gmra.mxu0 %vm424_vm5, %v1052_v20 }
 0xc68   : > { %v1117_v21 = vpop.permute.xlu0 %1116 }
 0xc69   : > { %1534 = vmatmul.msk.f32.vlgmr.msra.gmra.mxu1 %vm424_vm5, %v1117_v21 }
 0xcd5   : > { %v1016_v22 = vpop.xlane.xlu1 %1015 }
 0xcd6   : > { %v1017_v23 = vsub.f32 %v1012_v18, %v1016_v22  ;;  %v1605_v18 = vld [vmem:[%s2049_s5 + $0x18] sm:$0xff] }
 0xcd8   : > { %v1018_v25 = vmul.f32 1.442695, %v1017_v23 }
 0xcda   : > { %1668 = vpow2.f32 %v1018_v25 }
 0xcdc   : > { %v1960_v26 = vpop.f32.mrf.mxu0 }
 0xce0   : > { %v1669_v27 = vpop.eup %1668 }
 0xce1   : > { %v1020_v28 = vsel %vm424_vm5, %v1669_v27, 0.0 }
 0xce2   : > { %1021 = vadd.xlane.f32.xlu1 %v1020_v28 }
 0xce4   : > { %v1076_v29 = vpop.f32.mrf.mxu0 }
 0xce5   : > { %v1077_v30 = vadd.f32 %v1829_v42, %v1076_v29  ;;  %v1254_v29 = vperm.slane %v1995_v5, 1 }
 0xce6   : > { %v1141_v32 = vpop.f32.mrf.mxu1 }
 0xce7   : > { %v1142_v33 = vadd.f32 %v1829_v42, %v1141_v32  ;;  %v1079_v34 = vsel %vm424_vm5, %v1077_v30, -inf  ;;  %v1256_v32 = vperm.slane %v1995_v5, 2 }
 0xce8   : > { %1080 = vmax.xlane.f32.xlu2 %v1079_v34 }
 0xce9   : > { %v1144_v36 = vsel %vm424_vm5, %v1142_v33, -inf }
 0xcea   : > { %1145 = vmax.xlane.f32.xlu0 %v1144_v36 }
 0xcfb   : > { %1025 = vrot.lane.b32.xlu1 %v1927_v62, %s1700_s16 }
 0xd55   : > { %v1022_v43 = vpop.xlane.xlu1 %1021 }
 0xd5b   : > { %v1081_v37 = vpop.xlane.xlu2 %1080 }
 0xd5c   : > { %v1082_v35 = vsub.f32 %v1077_v30, %v1081_v37 }
 0xd5d   : > { %v1146_v38 = vpop.xlane.xlu0 %1145 }
 0xd5e   : > { %v1083_v39 = vmul.f32 1.442695, %v1082_v35  ;;  %v1147_v40 = vsub.f32 %v1142_v33, %v1146_v38  ;;  %v1609_v35 = vld [vmem:[%s2051_s7 + $0x38] sm:$0xff]  ;;  %v1608_v38 = vld [vmem:[%s2051_s7 + $0x30] sm:$0xff] }
 0xd5f   : > { %1348 = vmatpush.bf16.msrb.mxu1 %v1609_v35 }
 0xd60   : > { %1670 = vpow2.f32 %v1083_v39  ;;  %v1148_v41 = vmul.f32 1.442695, %v1147_v40  ;;  %v1607_v39 = vld [vmem:[%s2051_s7 + $0x28] sm:$0xff]  ;;  %v1606_v40 = vld [vmem:[%s2051_s7 + $0x20] sm:$0xff] }
 0xd62   : > { %1672 = vpow2.f32 %v1148_v41  ;;  %v1637_v41 = vld [vmem:[%s2050_s6 + $0x1] ss:$0 sm:$0xff] }
 0xd63   : > { %1674 = vrcp.f32 %v1022_v43  ;;  %1349 = vmatpush.bf16.msrb.mxu1 %v1608_v38 }
 0xd66   : > { %v1671_v42 = vpop.eup %1670 }
 0xd67   : > { %v1085_v44 = vsel %vm424_vm5, %v1671_v42, 0.0  ;;  %1350 = vmatpush.bf16.msrb.mxu1 %v1607_v39 }
 0xd68   : > { %v1673_v45 = vpop.eup %1672  ;;  %1086 = vadd.xlane.f32.xlu2 %v1085_v44 }
 0xd69   : > { %v1150_v46 = vsel %vm424_vm5, %v1673_v45, 0.0  ;;  %v1675_v47 = vpop.eup %1674 }
 0xd6a   : > { %1151 = vadd.xlane.f32.xlu0 %v1150_v46  ;;  %v1024_v48 = vmul.f32 %v1675_v47, %v1669_v27 }
 0xd6b   : > { %1351 = vmatpush.bf16.msrb.mxu1 %v1606_v40 }
 0xd6d   : > { %v1026_v49 = vpop.permute.xlu1 %1025 }
 0xd6e   : > { %1046 = vmatpush.msrb.mxu3 %v1026_v49 }
 0xd6f   : > { %1529 = vmatmul.msk.f32.vlgmr.msrb.gmra.mxu3 %vm424_vm5, %v1024_v48 }
 0xd7e   : > { %1155 = vrot.lane.b32.xlu0 %v1927_v62, %s2060_s26 }
 0xd80   : > { %1090 = vrot.lane.b32.xlu2 %v1927_v62, %s2061_s27  ;;  %v1602_v62 = vld [vmem:[%s2048_s4 + $0x10] sm:$0xff] }
 0xd81   : > { %1225 = vmatpush.bf16.msra.mxu0 %v1602_v62 }
 0xddb   : > { %v1087_v50 = vpop.xlane.xlu2 %1086 }
 0xddc   : > { %1676 = vrcp.f32 %v1087_v50 }
 0xddd   : > { %v1152_v54 = vpop.xlane.xlu0 %1151 }
 0xdde   : > { %1678 = vrcp.f32 %v1152_v54 }
 0xde2   : > { %v1677_v51 = vpop.eup %1676 }
 0xde3   : > { %v1089_v52 = vmul.f32 %v1677_v51, %v1671_v42  ;;  %v1091_v53 = vpop.permute.xlu2 %1090 }
 0xde4   : > { %1111 = vmatpush.msra.mxu2 %v1091_v53  ;;  %v1679_v55 = vpop.eup %1678 }
 0xde5   : > { %1532 = vmatmul.msk.f32.vlgmr.msra.gmra.mxu2 %vm424_vm5, %v1089_v52  ;;  %v1154_v56 = vmul.f32 %v1679_v55, %v1673_v45  ;;  %v1316_v55 = vperm.slane %v1995_v5, 3 }
 0xde6   : > { %1290 = vmatpush.bf16.msrb.mxu2 %v1605_v18 }
 0xdf0   : > { %v1156_v57 = vpop.permute.xlu0 %1155 }
 0xdf1   : > { %1176 = vmatpush.msra.mxu3 %v1156_v57 }
 0xdf2   : > { %v1048_v31 = vpop.f32.mrf.mxu3  ;;  %1535 = vmatmul.msk.f32.vlgmr.msra.gmra.mxu3 %vm424_vm5, %v1154_v56 }
 0xdf3   : > { %1182 = vrot.lane.b32.xlu1 %v1048_v31, %s2062_s28 }
 0xe65   : > { %v1183_v24 = vpop.permute.xlu1 %1182 }
 0xe66   : > { %v1193_v0 = vsel %vm424_vm5, %v1960_v26, %v1183_v24 }
 0xe68   : > { %v1113_v59 = vpop.f32.mrf.mxu2 }
 0xe69   : > { %1186 = vrot.lane.b32.xlu2 %v1113_v59, %s2063_s29 }
 0xe75   : > { %v1178_v60 = vpop.f32.mrf.mxu3 }
 0xe76   : > { %1190 = vrot.lane.b32.xlu0 %v1178_v60, %s2064_s12 }
 0xec3   : > { %v1187_v63 = vpop.permute.xlu2 %1186 }
 0xec4   : > { %v1194_v1 = vsel %vm694_vm6, %v1193_v0, %v1187_v63 }
 0xee8   : > { %v1191_v2 = vpop.permute.xlu0 %1190 }
 0xee9   : > { %v1195_v3 = vsel %vm696_vm7, %v1194_v1, %v1191_v2 }
 0xeea   : > { %v1196_v4 = vpack.c.bf16 %v1195_v3, %v1195_v3 }
 0xeec   : > { %1548 = vmatmul.msk.bf16.vlgmr.msra.gmra.mxu0 %vm347_vm0, %v1196_v4 }
 0xf69   : > { %v1227_v7 = vpop.f32.mrf.mxu0 }
 0xf6a   : > { %v1228_v9 = vadd.f32 %v1227_v7, %v1202_v6 }
 0xf6c   : > { %v1231_v10 = vadd.f32 %v1228_v9, %v1919_v58  ;;  %v1604_v58 = vld [vmem:[%s2049_s5 + $0x10] sm:$0xff] }
 0xf6d   : > { %1291 = vmatpush.bf16.msrb.mxu2 %v1604_v58 }
 0xf6e   : > { %v1232_v11 = vsel %vm347_vm0, %v1231_v10, 0.0 }
 0xf6f   : > { %1233 = vadd.xlane.f32.xlu1 %v1232_v11 }
 0xf71   : > { %v1229_v12 = vpop.f32.mrf.mxu0 }
 0xf72   : > { %v1380_v12 = vperm.slane %v1995_v5, 4 }
 0xfe2   : > { %v1234_v13 = vpop.xlane.xlu1 %1233 }
 0xfe3   : > { %v1235_v14 = vmul.f32 %v1234_v13, %v1780_v8 }
 0xfe5   : > { %v1236_v15 = vsub.f32 %v1231_v10, %v1235_v14  ;;  %v1382_v14 = vperm.slane %v1995_v5, 5 }
 0xfe7   : > { %v1237_v16 = vmul.f32 %v1236_v15, %v1236_v15 }
 0xfe9   : > { %v1238_v17 = vsel %vm347_vm0, %v1237_v16, 0.0 }
 0xfea   : > { %1239 = vadd.xlane.f32.xlu2 %v1238_v17 }
0x105d   : > { %v1240_v19 = vpop.xlane.xlu2 %1239 }
0x105e   : > { %v1241_v20 = vmul.f32 %v1240_v19, %v1780_v8 }
0x1060   : > { %v1242_v21 = vadd.f32 1e-12, %v1241_v20 }
0x1062   : > { %1680 = vrsqrt.f32 %v1242_v21  ;;  %vm1249_vm1 = vweird.f32 %v1242_v21 }
0x1068   : > { %v1681_v22 = vpop.eup %1680 }
0x1069   : > { %v1244_v23 = vmul.f32 %v1681_v22, %v1242_v21  ;;  %vm1250_vm15 = vweird.f32 %v1681_v22 }
0x106a   : > { %vm1251_vm2 = vmor %vm1249_vm1, %vm1250_vm15 }
0x106b   : > { %v1245_v25 = vmul.f32 %v1681_v22, %v1244_v23 }
0x106d   : > { %v1246_v26 = vmul.f32 0.5, %v1245_v25 }
0x106f   : > { %v1247_v27 = vsub.f32 1.5, %v1246_v26 }
0x1071   : > { %v1248_v28 = vmul.f32 %v1681_v22, %v1247_v27 }
0x1073   : > { %v1252_v30 = vsel %vm1251_vm2, %v1681_v22, %v1248_v28 }
0x1074   : > { %v1253_v33 = vmul.f32 %v1252_v30, %v1236_v15 }
0x1076   : > { %v1255_v34 = vmul.f32 %v1254_v29, %v1253_v33 }
0x1078   : > { %v1257_v36 = vadd.f32 %v1256_v32, %v1255_v34 }
0x107a   : > { %v1258_v37 = vpack.c.bf16 %v1257_v36, %v1257_v36 }
0x107c   : > { %1562 = vmatmul.msk.bf16.vlgmr.msrb.gmra.mxu2 %vm347_vm0, %v1258_v37 }
0x10ff   : > { %v1293_v43 = vpop.f32.mrf.mxu2 }
0x1100   : > { %v1294_v42 = vadd.f32 %v1637_v41, %v1293_v43 }
0x1102   : > { %v1298_v44 = vmul.f32 0.044715, %v1294_v42  ;;  %v1297_v51 = vmul.f32 0.5, %v1294_v42 }
0x1104   : > { %v1299_v45 = vmul.f32 %v1298_v44, %v1294_v42 }
0x1106   : > { %v1300_v46 = vmul.f32 %v1299_v45, %v1294_v42 }
0x1107   : > { %v1295_v47 = vpop.f32.mrf.mxu2 }
0x1108   : > { %v1301_v48 = vadd.f32 %v1300_v46, %v1294_v42 }
0x110a   : > { %v1302_v49 = vmul.f32 0.7978846, %v1301_v48 }
0x110c   : > { %1682 = vtanh.f32 %v1302_v49 }
0x1112   : > { %v1683_v50 = vpop.eup %1682 }
0x1113   : > { %v1304_v52 = vadd.f32 1.0, %v1683_v50 }
0x1115   : > { %v1305_v53 = vmul.f32 %v1304_v52, %v1297_v51 }
0x1117   : > { %v1306_v54 = vpack.c.bf16 %v1305_v53, %v1305_v53 }
0x1119   : > { %1587 = vmatmul.msk.bf16.vlgmr.msrb.gmra.mxu1 %vm839_vm11, %v1306_v54 }
0x1196   : > { %v1353_v56 = vpop.f32.mrf.mxu1 }
0x1197   : > { %v1354_v57 = vadd.f32 %v1353_v56, %v1316_v55 }
0x1199   : > { %v1357_v31 = vadd.f32 %v1354_v57, %v1257_v36 }
0x119b   : > { %v1358_v59 = vsel %vm347_vm0, %v1357_v31, 0.0 }
0x119c   : > { %1359 = vadd.xlane.f32.xlu0 %v1358_v59 }
0x119e   : > { %v1355_v60 = vpop.f32.mrf.mxu1 }
0x120f   : > { %v1360_v61 = vpop.xlane.xlu0 %1359 }
0x1210   : > { %v1361_v62 = vmul.f32 %v1360_v61, %v1780_v8 }
0x1212   : > { %v1362_v24 = vsub.f32 %v1357_v31, %v1361_v62 }
0x1214   : > { %v1363_v63 = vmul.f32 %v1362_v24, %v1362_v24 }
0x1216   : > { %v1364_v0 = vsel %vm347_vm0, %v1363_v63, 0.0 }
0x1217   : > { %1365 = vadd.xlane.f32.xlu2 %v1364_v0 }
0x128a   : > { %v1366_v1 = vpop.xlane.xlu2 %1365 }
0x128b   : > { %v1367_v2 = vmul.f32 %v1366_v1, %v1780_v8 }
0x128d   : > { %v1368_v3 = vadd.f32 1e-12, %v1367_v2 }
0x128f   : > { %1684 = vrsqrt.f32 %v1368_v3  ;;  %vm1375_vm4 = vweird.f32 %v1368_v3 }
0x1295   : > { %v1685_v4 = vpop.eup %1684 }
0x1296   : > { %v1370_v6 = vmul.f32 %v1685_v4, %v1368_v3  ;;  %vm1376_vm3 = vweird.f32 %v1685_v4 }
0x1297   : > { %vm1377_vm5 = vmor %vm1375_vm4, %vm1376_vm3 }
0x1298   : > { %v1371_v7 = vmul.f32 %v1685_v4, %v1370_v6 }
0x129a   : > { %v1372_v9 = vmul.f32 0.5, %v1371_v7 }
0x129c   : > { %v1373_v10 = vsub.f32 1.5, %v1372_v9 }
0x129e   : > { %v1374_v11 = vmul.f32 %v1685_v4, %v1373_v10 }
0x12a0   : > { %v1378_v13 = vsel %vm1377_vm5, %v1685_v4, %v1374_v11 }
0x12a1   : > { %v1379_v15 = vmul.f32 %v1378_v13, %v1362_v24 }
0x12a3   : > { %v1381_v16 = vmul.f32 %v1380_v12, %v1379_v15 }
0x12a5   : > { %v1383_v8 = vadd.f32 %v1382_v14, %v1381_v16 }
0x12a7   : > { %1384 = vst.msk [vmem:[%s341_s23] sm:$0xff] %vm347_vm0, %v1383_v8 }
0x12a8 PF: > { %s19_s30 = sadd.s32 1, %s1692_s30  }
0x12a9   : > { %p16_p4 = scmp.ge.s32.totalorder %s19_s30, 4  }
0x12ab   :  { %18 = sbr.rel (!%p16_p4) target bundleno = 1 (0x1), region = 95 }

</bundles_post_ra>
